<compile_context>
chip_gen: v6e
topology: v6e:2x2x1
jax: 0.10.0
libtpu: 0.0.40
codegen_flags: <defaults>
</compile_context>

<pallas_src>
import functools

import numpy as np
import jax
import jax.numpy as jnp
from jax import lax
from jax.experimental import pallas as pl
from jax.experimental.pallas import tpu as pltpu


def _round_up(x, m):
    return (x + m - 1) // m * m


# ----------------------------------------------------------------------------
# Kernel body
# ----------------------------------------------------------------------------
def _make_fused_fm_kernel(num_hidden, rank):
    """Fused FM interaction + LayerNorm + MLP kernel body."""

    def kernel(x_ref, k1_ref, tm_ref, s_ref, gamma_ref, beta_ref, *rest):
        mlp_refs = rest[:-1]            # num_hidden * (w, b) + (w_out, b_out)
        out_ref = rest[-1]
        cdt = k1_ref.dtype              # MXU operand dtype (weights pre-cast)

        tb = x_ref.shape[0]
        n = gamma_ref.shape[-1]         # F * R

        x = x_ref[...]                  # (TB, F*D) f32, lane-dense
        xm = x.astype(cdt)

        # ---- FM stage A: W-contraction as ONE lane-dense MXU matmul --------
        # t2[b, r*D + d] = sum_f x[b, f, d] * W[f, r]
        t2 = jnp.dot(xm, k1_ref[...], preferred_element_type=jnp.float32)
        t2m = t2.astype(cdt)

        # ---- FM stage B: per-r broadcast / multiply / d-reduction ----------
        # No per-sample matmuls, no 3-D lane-sparse intermediates.
        h = jnp.zeros((tb, n), jnp.float32)
        for r in range(rank):
            # te[b, f*D + d] = t[b, d, r]   (0/1 tile matmul, shared structure)
            te = jnp.dot(t2m, tm_ref[r], preferred_element_type=jnp.float32)
            p = x * te                                           # f32 VPU
            # h[b, r*F + f] += sum_d p[b, f*D + d]  (0/1 reduce matmul)
            h = h + jnp.dot(p.astype(cdt), s_ref[r],
                            preferred_element_type=jnp.float32)

        # ---- LayerNorm (single-pass variance, f32 elementwise) -------------
        mu = jnp.mean(h, axis=-1, keepdims=True)
        var = jnp.maximum(
            jnp.mean(h * h, axis=-1, keepdims=True) - mu * mu, 0.0)
        h = (h - mu) * lax.rsqrt(var + 1e-5)
        h = h * gamma_ref[...] + beta_ref[...]

        # ---- MLP: num_hidden x (Linear -> ReLU), then Linear ---------------
        # TODO(synk): training-mode dropout not implemented (identity in eval).
        for i in range(num_hidden):
            w = mlp_refs[2 * i][...]
            b = mlp_refs[2 * i + 1][...]
            h = jnp.maximum(
                jnp.dot(h.astype(cdt), w,
                        preferred_element_type=jnp.float32) + b, 0.0)
        w = mlp_refs[2 * num_hidden][...]
        b = mlp_refs[2 * num_hidden + 1][...]
        out = jnp.dot(h.astype(cdt), w, preferred_element_type=jnp.float32) + b
        out_ref[...] = out.astype(out_ref.dtype)

    return kernel


# ----------------------------------------------------------------------------
# One-time parameter preparation (OUTSIDE the jitted forward)
# ----------------------------------------------------------------------------
def prepare_params(params, *, num_emb_in, num_emb_out, dim_emb, rank,
                   num_hidden, dim_hidden, mxu_dtype=jnp.bfloat16):
    """Pre-layout the parameters for the fused kernel (run once)."""
    F, D, R = num_emb_in, dim_emb, rank
    O = num_emb_out * dim_emb
    H = dim_hidden
    Hp = _round_up(H, 128)          # lane-dense hidden width (exact: zero pad)
    Op = _round_up(O, 128)          # lane-dense output width

    W = np.asarray(params["fm_weight"], np.float32)              # (F, R)

    # K1[f*D + d, r*D + d] = W[f, r]
    K1 = np.einsum("fr,de->fdre", W,
                   np.eye(D, dtype=np.float32)).reshape(F * D, R * D)

    # TM[r, r*D + d, f*D + d] = 1  (tile t[:, d, r] over f)
    tile_blk = np.tile(np.eye(D, dtype=np.float32), (1, F))      # (D, F*D)
    TM = np.zeros((R, R * D, F * D), np.float32)
    for r in range(R):
        TM[r, r * D:(r + 1) * D, :] = tile_blk

    # S[r, f*D + d, r*F + f] = 1   (reduce over d into output block r)
    red_blk = np.kron(np.eye(F, dtype=np.float32),
                      np.ones((D, 1), np.float32))                # (F*D, F)
    S = np.zeros((R, F * D, R * F), np.float32)
    for r in range(R):
        S[r, :, r * F:(r + 1) * F] = red_blk

    # Kernel produces h in r-major layout: h[:, r*F + f] == torch h[:, f*R + r]
    perm = (np.arange(F)[None, :] * R + np.arange(R)[:, None]).reshape(-1)

    gamma = jnp.asarray(params["ln_gamma"], jnp.float32)[:, perm]
    beta = jnp.asarray(params["ln_beta"], jnp.float32)[:, perm]

    mlp = []
    row_pad = 0
    row_perm = perm
    for i in range(num_hidden):
        w = jnp.asarray(params["w_hidden"][i], jnp.float32)
        if row_perm is not None:
            w = w[row_perm, :]
        w = jnp.pad(w, ((0, row_pad), (0, Hp - H)))
        b = jnp.pad(jnp.asarray(params["b_hidden"][i], jnp.float32),
                    ((0, 0), (0, Hp - H)))
        mlp += [w.astype(mxu_dtype), b]
        row_pad = Hp - H
        row_perm = None
    w_out = jnp.asarray(params["w_out"], jnp.float32)
    if row_perm is not None:            # num_hidden == 0
        w_out = w_out[row_perm, :]
    w_out = jnp.pad(w_out, ((0, row_pad), (0, Op - O)))
    b_out = jnp.pad(jnp.asarray(params["b_out"], jnp.float32),
                    ((0, 0), (0, Op - O)))
    mlp += [w_out.astype(mxu_dtype), b_out]

    return [jnp.asarray(K1, mxu_dtype), jnp.asarray(TM, mxu_dtype),
            jnp.asarray(S, mxu_dtype), gamma, beta] + mlp


# ----------------------------------------------------------------------------
# Batch-tile selection (review: big tiles, but keep >= ~8 steps per TC)
# ----------------------------------------------------------------------------
def _pick_batch_tile(B, batch_tile, *, min_steps=16, min_tile=64):
    TB = min(batch_tile, B)
    if TB < 8 or TB % 8 != 0:
        return B                       # tiny / odd batch: single full tile
    while TB > min_tile and (B + TB - 1) // TB < min_steps:
        TB //= 2
    return max(TB, 8)


# ----------------------------------------------------------------------------
# Jitted forward
# ----------------------------------------------------------------------------
@functools.partial(
    jax.jit,
    static_argnames=("num_emb_in", "num_emb_out", "dim_emb", "rank",
                     "num_hidden", "dim_hidden", "batch_tile", "out_dtype"))
def factorization_machine_block(x, prepared, *, num_emb_in, num_emb_out,
                                dim_emb, rank, num_hidden, dim_hidden,
                                batch_tile=2048, out_dtype=jnp.float32):
    B, F, D = x.shape
    assert (F, D) == (num_emb_in, dim_emb)
    O = num_emb_out * dim_emb
    Op = _round_up(O, 128)

    TB = _pick_batch_tile(B, batch_tile)
    grid = ((B + TB - 1) // TB,)

    # Lane-dense input: merging the trailing (F, D) dims is a free row-major view.
    x_flat = x.reshape(B, F * D)

    kernel = _make_fused_fm_kernel(num_hidden, rank)

    def _const(arr):        # whole array VMEM-resident, same block every step
        return pl.BlockSpec(arr.shape, lambda b, n=arr.ndim: (0,) * n)

    in_specs = ([pl.BlockSpec((TB, F * D), lambda b: (b, 0))]
                + [_const(a) for a in prepared])

    out = pl.pallas_call(
        kernel,
        out_shape=jax.ShapeDtypeStruct((B, Op), out_dtype),
        grid_spec=pltpu.PrefetchScalarGridSpec(
            num_scalar_prefetch=0,
            grid=grid,
            in_specs=in_specs,
            out_specs=pl.BlockSpec((TB, Op), lambda b: (b, 0)),  # lane-dense
        ),
        compiler_params=pltpu.CompilerParams(
            dimension_semantics=("parallel",),     # megacore sharding on v7x
            vmem_limit_bytes=48 * 1024 * 1024,     # safe under v7x 64 MiB VMEM
        ),
    )(x_flat, *prepared)

    if Op != O:
        out = out[:, :O]
    return out.reshape(B, num_emb_out, dim_emb)


# ----------------------------------------------------------------------------
# Parameter init + pure-JAX reference (torch layout / semantics, eval mode)
# ----------------------------------------------------------------------------
def init_params(key, *, num_emb_in, num_emb_out, dim_emb, rank, num_hidden,
                dim_hidden):
    N = num_emb_in * rank
    H = dim_hidden
    O = num_emb_out * dim_emb
    ks = jax.random.split(key, 2 * num_hidden + 3)

    def uni(k, shape, fan_in):
        bound = (6.0 / fan_in) ** 0.5
        return jax.random.uniform(k, shape, jnp.float32, -bound, bound)

    params = {
        "fm_weight": uni(ks[0], (num_emb_in, rank), num_emb_in),
        "ln_gamma": jnp.ones((1, N), jnp.float32),
        "ln_beta": jnp.zeros((1, N), jnp.float32),
        "w_hidden": [],
        "b_hidden": [],
    }
    d_in, idx = N, 1
    for _ in range(num_hidden):
        params["w_hidden"].append(uni(ks[idx], (d_in, H), d_in)); idx += 1
        params["b_hidden"].append(uni(ks[idx], (1, H), d_in)); idx += 1
        d_in = H
    params["w_out"] = uni(ks[idx], (d_in, O), d_in); idx += 1
    params["b_out"] = uni(ks[idx], (1, O), d_in)
    return params


def reference(x, params, *, num_emb_in, num_emb_out, dim_emb, rank, num_hidden):
    B = x.shape[0]
    t = jnp.einsum("bfd,fr->bdr", x, params["fm_weight"])        # permute+matmul
    fm = jnp.einsum("bfd,bdr->bfr", x, t)                        # bmm
    h = fm.reshape(B, num_emb_in * rank)                         # view
    mean = h.mean(-1, keepdims=True)
    var = ((h - mean) ** 2).mean(-1, keepdims=True)
    h = (h - mean) / jnp.sqrt(var + 1e-5)
    h = h * params["ln_gamma"] + params["ln_beta"]               # LayerNorm
    for i in range(num_hidden):
        h = jax.nn.relu(h @ params["w_hidden"][i] + params["b_hidden"][i])
    out = h @ params["w_out"] + params["b_out"]
    return out.reshape(B, num_emb_out, dim_emb)


# ----------------------------------------------------------------------------
if __name__ == "__main__":
    num_emb_in, num_emb_out, dim_emb, rank = 16, 8, 16, 4
    num_hidden, dim_hidden, dropout = 2, 32, 0.0
    B = 128          # multiple batch tiles so the batch grid actually pipelines

    key = jax.random.PRNGKey(0)
    kx, kp = jax.random.split(key)
    x = jax.random.normal(kx, (B, num_emb_in, dim_emb), jnp.float32)
    params = init_params(kp, num_emb_in=num_emb_in, num_emb_out=num_emb_out,
                         dim_emb=dim_emb, rank=rank, num_hidden=num_hidden,
                         dim_hidden=dim_hidden)

    ref = reference(x, params, num_emb_in=num_emb_in, num_emb_out=num_emb_out,
                    dim_emb=dim_emb, rank=rank, num_hidden=num_hidden)

    cfg = dict(num_emb_in=num_emb_in, num_emb_out=num_emb_out, dim_emb=dim_emb,
               rank=rank, num_hidden=num_hidden, dim_hidden=dim_hidden)

    # Exact-semantics check (f32 MXU operands).
    prep_f32 = prepare_params(params, mxu_dtype=jnp.float32, **cfg)
    out_f32 = factorization_machine_block(x, prep_f32, **cfg)
    out_f32 = jax.block_until_ready(out_f32)
    assert out_f32.shape == (B, num_emb_out, dim_emb)
    assert jnp.allclose(out_f32, ref, rtol=3e-2, atol=3e-2), \
        "Pallas f32 output mismatch vs reference"

    # Performance configuration (bf16 MXU operands, f32 accumulation).
    prep_bf16 = prepare_params(params, mxu_dtype=jnp.bfloat16, **cfg)
    out_bf16 = factorization_machine_block(x, prep_bf16, **cfg)
    out_bf16 = jax.block_until_ready(out_bf16)
    assert jnp.allclose(out_bf16, ref, rtol=1e-1, atol=1e-1), \
        "Pallas bf16 output mismatch vs reference"

    print("KERNEL_OK")
</pallas_src>

<mosaic_0001>
module attributes {stable_mosaic.version = 11 : i64} {
  func.func @kernel(%arg0: i32, %arg1: memref<64x256xf32, #tpu.memory_space<vmem>>, %arg2: memref<256x64xf32, #tpu.memory_space<vmem>>, %arg3: memref<4x64x256xf32, #tpu.memory_space<vmem>>, %arg4: memref<4x256x64xf32, #tpu.memory_space<vmem>>, %arg5: memref<1x64xf32, #tpu.memory_space<vmem>>, %arg6: memref<1x64xf32, #tpu.memory_space<vmem>>, %arg7: memref<64x128xf32, #tpu.memory_space<vmem>>, %arg8: memref<1x128xf32, #tpu.memory_space<vmem>>, %arg9: memref<128x128xf32, #tpu.memory_space<vmem>>, %arg10: memref<1x128xf32, #tpu.memory_space<vmem>>, %arg11: memref<128x128xf32, #tpu.memory_space<vmem>>, %arg12: memref<1x128xf32, #tpu.memory_space<vmem>>, %arg13: memref<64x128xf32, #tpu.memory_space<vmem>>) attributes {dimension_semantics = [#tpu.dimension_semantics<parallel>], iteration_bounds = array<i64: 2>, scalar_prefetch = 0 : i64, scratch_operands = 0 : i64, tpu.core_type = #tpu.core_type<tc>, window_params = [{transform_indices = @transform_0, window_bounds = array<i64: 64, 256>}, {pipeline_mode = #tpu.pipeline_mode<synchronous>, transform_indices = @transform_1, window_bounds = array<i64: 256, 64>}, {pipeline_mode = #tpu.pipeline_mode<synchronous>, transform_indices = @transform_2, window_bounds = array<i64: 4, 64, 256>}, {pipeline_mode = #tpu.pipeline_mode<synchronous>, transform_indices = @transform_3, window_bounds = array<i64: 4, 256, 64>}, {pipeline_mode = #tpu.pipeline_mode<synchronous>, transform_indices = @transform_4, window_bounds = array<i64: 1, 64>}, {pipeline_mode = #tpu.pipeline_mode<synchronous>, transform_indices = @transform_5, window_bounds = array<i64: 1, 64>}, {pipeline_mode = #tpu.pipeline_mode<synchronous>, transform_indices = @transform_6, window_bounds = array<i64: 64, 128>}, {pipeline_mode = #tpu.pipeline_mode<synchronous>, transform_indices = @transform_7, window_bounds = array<i64: 1, 128>}, {pipeline_mode = #tpu.pipeline_mode<synchronous>, transform_indices = @transform_8, window_bounds = array<i64: 128, 128>}, {pipeline_mode = #tpu.pipeline_mode<synchronous>, transform_indices = @transform_9, window_bounds = array<i64: 1, 128>}, {pipeline_mode = #tpu.pipeline_mode<synchronous>, transform_indices = @transform_10, window_bounds = array<i64: 128, 128>}, {pipeline_mode = #tpu.pipeline_mode<synchronous>, transform_indices = @transform_11, window_bounds = array<i64: 1, 128>}, {transform_indices = @transform_12, window_bounds = array<i64: 64, 128>}]} {
    %c0 = arith.constant 0 : index
    %c0_0 = arith.constant 0 : index
    %0 = vector.load %arg1[%c0, %c0_0] : memref<64x256xf32, #tpu.memory_space<vmem>>, vector<64x256xf32>
    %c0_1 = arith.constant 0 : index
    %c0_2 = arith.constant 0 : index
    %1 = vector.load %arg2[%c0_1, %c0_2] : memref<256x64xf32, #tpu.memory_space<vmem>>, vector<256x64xf32>
    %cst = arith.constant dense<0.000000e+00> : vector<64x64xf32>
    %2 = tpu.matmul %0, %1, %cst {dimension_numbers = #tpu.dot_dimension_numbers<[1], [0], [0], [1], [0, 0, 1, 1], [], []>} : vector<64x256xf32>, vector<256x64xf32>, vector<64x64xf32> -> vector<64x64xf32>
    %cst_3 = arith.constant 0.000000e+00 : f32
    %3 = vector.broadcast %cst_3 : f32 to vector<64x64xf32>
    %c0_4 = arith.constant 0 : index
    %c0_5 = arith.constant 0 : index
    %c0_6 = arith.constant 0 : index
    %4 = vector.load %arg3[%c0_4, %c0_5, %c0_6] : memref<4x64x256xf32, #tpu.memory_space<vmem>>, vector<1x64x256xf32>
    %5 = vector.shape_cast %4 : vector<1x64x256xf32> to vector<64x256xf32>
    %cst_7 = arith.constant dense<0.000000e+00> : vector<64x256xf32>
    %6 = tpu.matmul %2, %5, %cst_7 {dimension_numbers = #tpu.dot_dimension_numbers<[1], [0], [0], [1], [0, 0, 1, 1], [], []>} : vector<64x64xf32>, vector<64x256xf32>, vector<64x256xf32> -> vector<64x256xf32>
    %7 = arith.mulf %0, %6 : vector<64x256xf32>
    %c0_8 = arith.constant 0 : index
    %c0_9 = arith.constant 0 : index
    %c0_10 = arith.constant 0 : index
    %8 = vector.load %arg4[%c0_8, %c0_9, %c0_10] : memref<4x256x64xf32, #tpu.memory_space<vmem>>, vector<1x256x64xf32>
    %9 = vector.shape_cast %8 : vector<1x256x64xf32> to vector<256x64xf32>
    %cst_11 = arith.constant dense<0.000000e+00> : vector<64x64xf32>
    %10 = tpu.matmul %7, %9, %cst_11 {dimension_numbers = #tpu.dot_dimension_numbers<[1], [0], [0], [1], [0, 0, 1, 1], [], []>} : vector<64x256xf32>, vector<256x64xf32>, vector<64x64xf32> -> vector<64x64xf32>
    %11 = arith.addf %3, %10 : vector<64x64xf32>
    %c1 = arith.constant 1 : index
    %c0_12 = arith.constant 0 : index
    %c0_13 = arith.constant 0 : index
    %12 = vector.load %arg3[%c1, %c0_12, %c0_13] : memref<4x64x256xf32, #tpu.memory_space<vmem>>, vector<1x64x256xf32>
    %13 = vector.shape_cast %12 : vector<1x64x256xf32> to vector<64x256xf32>
    %cst_14 = arith.constant dense<0.000000e+00> : vector<64x256xf32>
    %14 = tpu.matmul %2, %13, %cst_14 {dimension_numbers = #tpu.dot_dimension_numbers<[1], [0], [0], [1], [0, 0, 1, 1], [], []>} : vector<64x64xf32>, vector<64x256xf32>, vector<64x256xf32> -> vector<64x256xf32>
    %15 = arith.mulf %0, %14 : vector<64x256xf32>
    %c1_15 = arith.constant 1 : index
    %c0_16 = arith.constant 0 : index
    %c0_17 = arith.constant 0 : index
    %16 = vector.load %arg4[%c1_15, %c0_16, %c0_17] : memref<4x256x64xf32, #tpu.memory_space<vmem>>, vector<1x256x64xf32>
    %17 = vector.shape_cast %16 : vector<1x256x64xf32> to vector<256x64xf32>
    %cst_18 = arith.constant dense<0.000000e+00> : vector<64x64xf32>
    %18 = tpu.matmul %15, %17, %cst_18 {dimension_numbers = #tpu.dot_dimension_numbers<[1], [0], [0], [1], [0, 0, 1, 1], [], []>} : vector<64x256xf32>, vector<256x64xf32>, vector<64x64xf32> -> vector<64x64xf32>
    %19 = arith.addf %11, %18 : vector<64x64xf32>
    %c2 = arith.constant 2 : index
    %c0_19 = arith.constant 0 : index
    %c0_20 = arith.constant 0 : index
    %20 = vector.load %arg3[%c2, %c0_19, %c0_20] : memref<4x64x256xf32, #tpu.memory_space<vmem>>, vector<1x64x256xf32>
    %21 = vector.shape_cast %20 : vector<1x64x256xf32> to vector<64x256xf32>
    %cst_21 = arith.constant dense<0.000000e+00> : vector<64x256xf32>
    %22 = tpu.matmul %2, %21, %cst_21 {dimension_numbers = #tpu.dot_dimension_numbers<[1], [0], [0], [1], [0, 0, 1, 1], [], []>} : vector<64x64xf32>, vector<64x256xf32>, vector<64x256xf32> -> vector<64x256xf32>
    %23 = arith.mulf %0, %22 : vector<64x256xf32>
    %c2_22 = arith.constant 2 : index
    %c0_23 = arith.constant 0 : index
    %c0_24 = arith.constant 0 : index
    %24 = vector.load %arg4[%c2_22, %c0_23, %c0_24] : memref<4x256x64xf32, #tpu.memory_space<vmem>>, vector<1x256x64xf32>
    %25 = vector.shape_cast %24 : vector<1x256x64xf32> to vector<256x64xf32>
    %cst_25 = arith.constant dense<0.000000e+00> : vector<64x64xf32>
    %26 = tpu.matmul %23, %25, %cst_25 {dimension_numbers = #tpu.dot_dimension_numbers<[1], [0], [0], [1], [0, 0, 1, 1], [], []>} : vector<64x256xf32>, vector<256x64xf32>, vector<64x64xf32> -> vector<64x64xf32>
    %27 = arith.addf %19, %26 : vector<64x64xf32>
    %c3 = arith.constant 3 : index
    %c0_26 = arith.constant 0 : index
    %c0_27 = arith.constant 0 : index
    %28 = vector.load %arg3[%c3, %c0_26, %c0_27] : memref<4x64x256xf32, #tpu.memory_space<vmem>>, vector<1x64x256xf32>
    %29 = vector.shape_cast %28 : vector<1x64x256xf32> to vector<64x256xf32>
    %cst_28 = arith.constant dense<0.000000e+00> : vector<64x256xf32>
    %30 = tpu.matmul %2, %29, %cst_28 {dimension_numbers = #tpu.dot_dimension_numbers<[1], [0], [0], [1], [0, 0, 1, 1], [], []>} : vector<64x64xf32>, vector<64x256xf32>, vector<64x256xf32> -> vector<64x256xf32>
    %31 = arith.mulf %0, %30 : vector<64x256xf32>
    %c3_29 = arith.constant 3 : index
    %c0_30 = arith.constant 0 : index
    %c0_31 = arith.constant 0 : index
    %32 = vector.load %arg4[%c3_29, %c0_30, %c0_31] : memref<4x256x64xf32, #tpu.memory_space<vmem>>, vector<1x256x64xf32>
    %33 = vector.shape_cast %32 : vector<1x256x64xf32> to vector<256x64xf32>
    %cst_32 = arith.constant dense<0.000000e+00> : vector<64x64xf32>
    %34 = tpu.matmul %31, %33, %cst_32 {dimension_numbers = #tpu.dot_dimension_numbers<[1], [0], [0], [1], [0, 0, 1, 1], [], []>} : vector<64x256xf32>, vector<256x64xf32>, vector<64x64xf32> -> vector<64x64xf32>
    %35 = arith.addf %27, %34 : vector<64x64xf32>
    %cst_33 = arith.constant dense<0.000000e+00> : vector<64xf32>
    %36 = vector.multi_reduction <add>, %35, %cst_33 [1] : vector<64x64xf32> to vector<64xf32>
    %37 = vector.shape_cast %36 : vector<64xf32> to vector<64x1xf32>
    %cst_34 = arith.constant 6.400000e+01 : f32
    %38 = vector.broadcast %cst_34 : f32 to vector<64x1xf32>
    %39 = arith.divf %37, %38 : vector<64x1xf32>
    %40 = arith.mulf %35, %35 : vector<64x64xf32>
    %cst_35 = arith.constant dense<0.000000e+00> : vector<64xf32>
    %41 = vector.multi_reduction <add>, %40, %cst_35 [1] : vector<64x64xf32> to vector<64xf32>
    %42 = vector.shape_cast %41 : vector<64xf32> to vector<64x1xf32>
    %cst_36 = arith.constant 6.400000e+01 : f32
    %43 = vector.broadcast %cst_36 : f32 to vector<64x1xf32>
    %44 = arith.divf %42, %43 : vector<64x1xf32>
    %45 = arith.mulf %39, %39 : vector<64x1xf32>
    %46 = arith.subf %44, %45 : vector<64x1xf32>
    %cst_37 = arith.constant 0.000000e+00 : f32
    %47 = vector.broadcast %cst_37 : f32 to vector<64x1xf32>
    %48 = arith.maximumf %46, %47 : vector<64x1xf32>
    %49 = vector.broadcast %39 : vector<64x1xf32> to vector<64x64xf32>
    %50 = arith.subf %35, %49 : vector<64x64xf32>
    %cst_38 = arith.constant 9.99999974E-6 : f32
    %51 = vector.broadcast %cst_38 : f32 to vector<64x1xf32>
    %52 = arith.addf %48, %51 : vector<64x1xf32>
    %53 = math.rsqrt %52 : vector<64x1xf32>
    %54 = vector.broadcast %53 : vector<64x1xf32> to vector<64x64xf32>
    %55 = arith.mulf %50, %54 : vector<64x64xf32>
    %c0_39 = arith.constant 0 : index
    %c0_40 = arith.constant 0 : index
    %56 = vector.load %arg5[%c0_39, %c0_40] : memref<1x64xf32, #tpu.memory_space<vmem>>, vector<1x64xf32>
    %57 = vector.broadcast %56 : vector<1x64xf32> to vector<64x64xf32>
    %58 = arith.mulf %55, %57 : vector<64x64xf32>
    %c0_41 = arith.constant 0 : index
    %c0_42 = arith.constant 0 : index
    %59 = vector.load %arg6[%c0_41, %c0_42] : memref<1x64xf32, #tpu.memory_space<vmem>>, vector<1x64xf32>
    %60 = vector.broadcast %59 : vector<1x64xf32> to vector<64x64xf32>
    %61 = arith.addf %58, %60 : vector<64x64xf32>
    %c0_43 = arith.constant 0 : index
    %c0_44 = arith.constant 0 : index
    %62 = vector.load %arg7[%c0_43, %c0_44] : memref<64x128xf32, #tpu.memory_space<vmem>>, vector<64x128xf32>
    %c0_45 = arith.constant 0 : index
    %c0_46 = arith.constant 0 : index
    %63 = vector.load %arg8[%c0_45, %c0_46] : memref<1x128xf32, #tpu.memory_space<vmem>>, vector<1x128xf32>
    %cst_47 = arith.constant dense<0.000000e+00> : vector<64x128xf32>
    %64 = tpu.matmul %61, %62, %cst_47 {dimension_numbers = #tpu.dot_dimension_numbers<[1], [0], [0], [1], [0, 0, 1, 1], [], []>} : vector<64x64xf32>, vector<64x128xf32>, vector<64x128xf32> -> vector<64x128xf32>
    %65 = vector.broadcast %63 : vector<1x128xf32> to vector<64x128xf32>
    %66 = arith.addf %64, %65 : vector<64x128xf32>
    %cst_48 = arith.constant 0.000000e+00 : f32
    %67 = vector.broadcast %cst_48 : f32 to vector<64x128xf32>
    %68 = arith.maximumf %66, %67 : vector<64x128xf32>
    %c0_49 = arith.constant 0 : index
    %c0_50 = arith.constant 0 : index
    %69 = vector.load %arg9[%c0_49, %c0_50] : memref<128x128xf32, #tpu.memory_space<vmem>>, vector<128x128xf32>
    %c0_51 = arith.constant 0 : index
    %c0_52 = arith.constant 0 : index
    %70 = vector.load %arg10[%c0_51, %c0_52] : memref<1x128xf32, #tpu.memory_space<vmem>>, vector<1x128xf32>
    %cst_53 = arith.constant dense<0.000000e+00> : vector<64x128xf32>
    %71 = tpu.matmul %68, %69, %cst_53 {dimension_numbers = #tpu.dot_dimension_numbers<[1], [0], [0], [1], [0, 0, 1, 1], [], []>} : vector<64x128xf32>, vector<128x128xf32>, vector<64x128xf32> -> vector<64x128xf32>
    %72 = vector.broadcast %70 : vector<1x128xf32> to vector<64x128xf32>
    %73 = arith.addf %71, %72 : vector<64x128xf32>
    %cst_54 = arith.constant 0.000000e+00 : f32
    %74 = vector.broadcast %cst_54 : f32 to vector<64x128xf32>
    %75 = arith.maximumf %73, %74 : vector<64x128xf32>
    %c0_55 = arith.constant 0 : index
    %c0_56 = arith.constant 0 : index
    %76 = vector.load %arg11[%c0_55, %c0_56] : memref<128x128xf32, #tpu.memory_space<vmem>>, vector<128x128xf32>
    %c0_57 = arith.constant 0 : index
    %c0_58 = arith.constant 0 : index
    %77 = vector.load %arg12[%c0_57, %c0_58] : memref<1x128xf32, #tpu.memory_space<vmem>>, vector<1x128xf32>
    %cst_59 = arith.constant dense<0.000000e+00> : vector<64x128xf32>
    %78 = tpu.matmul %75, %76, %cst_59 {dimension_numbers = #tpu.dot_dimension_numbers<[1], [0], [0], [1], [0, 0, 1, 1], [], []>} : vector<64x128xf32>, vector<128x128xf32>, vector<64x128xf32> -> vector<64x128xf32>
    %79 = vector.broadcast %77 : vector<1x128xf32> to vector<64x128xf32>
    %80 = arith.addf %78, %79 : vector<64x128xf32>
    %c0_60 = arith.constant 0 : index
    %c0_61 = arith.constant 0 : index
    %81 = vector.load %arg13[%c0_60, %c0_61] : memref<64x128xf32, #tpu.memory_space<vmem>>, vector<64x128xf32>
    tpu.vector_store %arg13[%c0_60, %c0_61], %80 {strides = array<i32>} : memref<64x128xf32, #tpu.memory_space<vmem>>, vector<64x128xf32>,
    return
  }
  func.func @transform_0(%arg0: i32) -> (i32, i32) {
    %c0_i32 = arith.constant 0 : i32
    %c0_i32_0 = arith.constant 0 : i32
    return %arg0, %c0_i32 : i32, i32
  }
  func.func @transform_1(%arg0: i32) -> (i32, i32) {
    %c0_i32 = arith.constant 0 : i32
    %c0_i32_0 = arith.constant 0 : i32
    %c0_i32_1 = arith.constant 0 : i32
    return %c0_i32, %c0_i32_0 : i32, i32
  }
  func.func @transform_2(%arg0: i32) -> (i32, i32, i32) {
    %c0_i32 = arith.constant 0 : i32
    %c0_i32_0 = arith.constant 0 : i32
    %c0_i32_1 = arith.constant 0 : i32
    %c0_i32_2 = arith.constant 0 : i32
    return %c0_i32, %c0_i32_0, %c0_i32_1 : i32, i32, i32
  }
  func.func @transform_3(%arg0: i32) -> (i32, i32, i32) {
    %c0_i32 = arith.constant 0 : i32
    %c0_i32_0 = arith.constant 0 : i32
    %c0_i32_1 = arith.constant 0 : i32
    %c0_i32_2 = arith.constant 0 : i32
    return %c0_i32, %c0_i32_0, %c0_i32_1 : i32, i32, i32
  }
  func.func @transform_4(%arg0: i32) -> (i32, i32) {
    %c0_i32 = arith.constant 0 : i32
    %c0_i32_0 = arith.constant 0 : i32
    %c0_i32_1 = arith.constant 0 : i32
    return %c0_i32, %c0_i32_0 : i32, i32
  }
  func.func @transform_5(%arg0: i32) -> (i32, i32) {
    %c0_i32 = arith.constant 0 : i32
    %c0_i32_0 = arith.constant 0 : i32
    %c0_i32_1 = arith.constant 0 : i32
    return %c0_i32, %c0_i32_0 : i32, i32
  }
  func.func @transform_6(%arg0: i32) -> (i32, i32) {
    %c0_i32 = arith.constant 0 : i32
    %c0_i32_0 = arith.constant 0 : i32
    %c0_i32_1 = arith.constant 0 : i32
    return %c0_i32, %c0_i32_0 : i32, i32
  }
  func.func @transform_7(%arg0: i32) -> (i32, i32) {
    %c0_i32 = arith.constant 0 : i32
    %c0_i32_0 = arith.constant 0 : i32
    %c0_i32_1 = arith.constant 0 : i32
    return %c0_i32, %c0_i32_0 : i32, i32
  }
  func.func @transform_8(%arg0: i32) -> (i32, i32) {
    %c0_i32 = arith.constant 0 : i32
    %c0_i32_0 = arith.constant 0 : i32
    %c0_i32_1 = arith.constant 0 : i32
    return %c0_i32, %c0_i32_0 : i32, i32
  }
  func.func @transform_9(%arg0: i32) -> (i32, i32) {
    %c0_i32 = arith.constant 0 : i32
    %c0_i32_0 = arith.constant 0 : i32
    %c0_i32_1 = arith.constant 0 : i32
    return %c0_i32, %c0_i32_0 : i32, i32
  }
  func.func @transform_10(%arg0: i32) -> (i32, i32) {
    %c0_i32 = arith.constant 0 : i32
    %c0_i32_0 = arith.constant 0 : i32
    %c0_i32_1 = arith.constant 0 : i32
    return %c0_i32, %c0_i32_0 : i32, i32
  }
  func.func @transform_11(%arg0: i32) -> (i32, i32) {
    %c0_i32 = arith.constant 0 : i32
    %c0_i32_0 = arith.constant 0 : i32
    %c0_i32_1 = arith.constant 0 : i32
    return %c0_i32, %c0_i32_0 : i32, i32
  }
  func.func @transform_12(%arg0: i32) -> (i32, i32) {
    %c0_i32 = arith.constant 0 : i32
    %c0_i32_0 = arith.constant 0 : i32
    return %arg0, %c0_i32 : i32, i32
  }
}

</mosaic_0001>

<bundles_post_ra>
// kernel: factorization_machine_block.1
= control target key start
LH: loop header
LB: loop body
LE: loop exit
PB: predicated region body
PF: predicated region fallthrough
CT: control target
= control target key end

     0   :  { %s3164_s21 = smov 0   ;;  %s4440_s0 = inlined_call_operand.vmem [shape: f32[128,256], index: 0, kind: input, shape index: {}]   ;;  %s4441_s1 = inlined_call_operand.vmem [shape: f32[256,64], index: 1, kind: input, shape index: {}]   ;;  %s4442_s2 = inlined_call_operand.vmem [shape: f32[4,64,256], index: 2, kind: input, shape index: {}]   ;;  %s4443_s3 = inlined_call_operand.vmem [shape: f32[4,256,64], index: 3, kind: input, shape index: {}]   ;;  %s4444_s4 = inlined_call_operand.vmem [shape: f32[1,64], index: 4, kind: input, shape index: {}]   ;;  %s4445_s5 = inlined_call_operand.vmem [shape: f32[1,64], index: 5, kind: input, shape index: {}]   ;;  %s4446_s6 = inlined_call_operand.vmem [shape: f32[64,128], index: 6, kind: input, shape index: {}]   ;;  %s4447_s7 = inlined_call_operand.vmem [shape: f32[1,128], index: 7, kind: input, shape index: {}]   ;;  %s4448_s8 = inlined_call_operand.vmem [shape: f32[128,128], index: 8, kind: input, shape index: {}]   ;;  %s4449_s9 = inlined_call_operand.vmem [shape: f32[1,128], index: 9, kind: input, shape index: {}]   ;;  %s4450_s10 = inlined_call_operand.vmem [shape: f32[128,128], index: 10, kind: input, shape index: {}]   ;;  %s4451_s11 = inlined_call_operand.vmem [shape: f32[1,128], index: 11, kind: input, shape index: {}]   ;;  %s4452_s12 = inlined_call_operand.vmem [shape: f32[128,128], index: 12, kind: output, shape index: {}]  }
   0x1 LB: > { %s2387_s22 = sadd.s32 4294967295, %s3096_s21   ;;  %p2391_p0 = scmp.ge.s32.totalorder %s3096_s21, 1  ;;  %s3096_s21 = sphi %s3164_s21, %s22_s21  }
   0x2   : > { %p364_p1 = scmp.lt.s32.totalorder %s3096_s21, 3 }
   0x4   : > { %p365_p2 = pnand %p2391_p0, %p364_p1 }
   0x5   : > { %s2392_s29 = sshll.u32 (!%p365_p2), %s2387_s22, 3 }
   0x6   : > { %368 = sbr.rel (%p365_p2) target bundleno = 1729 (0x6c1), region = 68  ;;  %p408_p3 = scmp.lt.s32.totalorder (!%p365_p2), %s2392_s29, 15 }
   0xb   : > { %v467_v0 = vld [vmem:[%s4441_s1 + $0xf8] sm:$0xff]  ;;  %v466_v2 = vld [vmem:[%s4441_s1 + $0xf0] sm:$0xff]  ;;  %v465_v4 = vld [vmem:[%s4441_s1 + $0xe8] sm:$0xff]  ;;  %s4454_s29 = smov (!%p408_p3, %s2392_s29), 15  ;;  %vm589_vm0 = vcmask 523264  }
   0xc   : > { %v451_v1 = vld [vmem:[%s4441_s1 + $0x78] sm:$0xff]  ;;  %2589 = vmatprep.subr.mxu0 %v467_v0  ;;  %v450_v3 = vld [vmem:[%s4441_s1 + $0x70] sm:$0xff]  ;;  %v449_v5 = vld [vmem:[%s4441_s1 + $0x68] sm:$0xff]  ;;  %s2588_s23 = sshll.u32 %s4454_s29, 4  ;;  %v3098_v0 = vmov 0.0   ;;  %s2396_s14 = sshll.u32 %s4454_s29, 3 }
   0xd   : > { %2590 = vmatpush3.msra.mxu0 %v451_v1  ;;  %v464_v6 = vld [vmem:[%s4441_s1 + $0xe0] sm:$0xff]  ;;  %v463_v8 = vld [vmem:[%s4441_s1 + $0xd8] sm:$0xff]  ;;  %s3208_s13 = scalar_lea.vmem %s4440_s0, %s2588_s23  ;;  %v462_v10 = vld [vmem:[%s4441_s1 + $0xd0] sm:$0xff]  ;;  %678 = vmatprep.mubr.f32.mxu1 %v3098_v0  ;;  %s418_s19 = scalar_lea.vmem %s4452_s12, %s2396_s14 }
   0xe   : > { %2591 = vmatprep.subr.mxu0 %v466_v2  ;;  %v448_v7 = vld [vmem:[%s4441_s1 + $0x60] sm:$0xff]  ;;  %v447_v9 = vld [vmem:[%s4441_s1 + $0x58] sm:$0xff]  ;;  %v446_v11 = vld [vmem:[%s4441_s1 + $0x50] sm:$0xff] }
   0xf   : > { %2592 = vmatpush3.msra.mxu0 %v450_v3  ;;  %v461_v12 = vld [vmem:[%s4441_s1 + $0xc8] sm:$0xff]  ;;  %v460_v15 = vld [vmem:[%s4441_s1 + $0xc0] sm:$0xff]  ;;  %v459_v17 = vld [vmem:[%s4441_s1 + $0xb8] sm:$0xff] }
  0x10   : > { %2593 = vmatprep.subr.mxu0 %v465_v4  ;;  %v3220_v13 = vld [vmem:[%s3208_s13 + $0x8] sm:$0xff]  ;;  %v444_v16 = vld [vmem:[%s4441_s1 + $0x40] sm:$0xff]  ;;  %v443_v18 = vld [vmem:[%s4441_s1 + $0x38] sm:$0xff] }
  0x11   : > { %2594 = vmatpush3.msra.mxu0 %v449_v5  ;;  %v445_v14 = vld [vmem:[%s4441_s1 + $0x48] sm:$0xff]  ;;  %532 = vmatprep.mubr.f32.mxu0 %v3220_v13  ;;  %v458_v19 = vld [vmem:[%s4441_s1 + $0xb0] sm:$0xff]  ;;  %v588_v20 = vld [vmem:[%s4442_s2 + $0x78] sm:$0xff] }
  0x12   : > { %2595 = vmatprep.subr.mxu0 %v464_v6  ;;  %v587_v21 = vld [vmem:[%s4442_s2 + $0x70] sm:$0xff]  ;;  %v586_v22 = vld [vmem:[%s4442_s2 + $0x68] sm:$0xff]  ;;  %630 = vmatprep.subr.mxu1 %v588_v20  ;;  %v585_v24 = vld [vmem:[%s4442_s2 + $0x60] sm:$0xff] }
  0x13   : > { %2596 = vmatpush3.msra.mxu0 %v448_v7  ;;  %v442_v23 = vld [vmem:[%s4441_s1 + $0x30] sm:$0xff]  ;;  %v457_v25 = vld [vmem:[%s4441_s1 + $0xa8] sm:$0xff]  ;;  %631 = vmatpush1.msra.mxu1 %v587_v21  ;;  %v584_v26 = vld [vmem:[%s4442_s2 + $0x58] sm:$0xff] }
  0x14   : > { %2597 = vmatprep.subr.mxu0 %v463_v8  ;;  %v441_v27 = vld [vmem:[%s4441_s1 + $0x28] sm:$0xff]  ;;  %632 = vmatprep.subr.mxu1 %v586_v22  ;;  %v583_v28 = vld [vmem:[%s4442_s2 + $0x50] sm:$0xff]  ;;  %v456_v29 = vld [vmem:[%s4441_s1 + $0xa0] sm:$0xff] }
  0x15   : > { %2598 = vmatpush3.msra.mxu0 %v447_v9  ;;  %633 = vmatpush1.msra.mxu1 %v585_v24  ;;  %v582_v30 = vld [vmem:[%s4442_s2 + $0x48] sm:$0xff]  ;;  %v440_v31 = vld [vmem:[%s4441_s1 + $0x20] sm:$0xff]  ;;  %v455_v33 = vld [vmem:[%s4441_s1 + $0x98] sm:$0xff] }
  0x16   : > { %2599 = vmatprep.subr.mxu0 %v462_v10  ;;  %634 = vmatprep.subr.mxu1 %v584_v26  ;;  %v581_v32 = vld [vmem:[%s4442_s2 + $0x40] sm:$0xff]  ;;  %v580_v34 = vld [vmem:[%s4442_s2 + $0x38] sm:$0xff]  ;;  %v579_v36 = vld [vmem:[%s4442_s2 + $0x30] sm:$0xff] }
  0x17   : > { %2600 = vmatpush3.msra.mxu0 %v446_v11  ;;  %635 = vmatpush1.msra.mxu1 %v583_v28  ;;  %v439_v35 = vld [vmem:[%s4441_s1 + $0x18] sm:$0xff]  ;;  %v454_v37 = vld [vmem:[%s4441_s1 + $0x90] sm:$0xff]  ;;  %v578_v38 = vld [vmem:[%s4442_s2 + $0x28] sm:$0xff] }
  0x18   : > { %2601 = vmatprep.subr.mxu0 %v461_v12  ;;  %636 = vmatprep.subr.mxu1 %v582_v30  ;;  %v438_v39 = vld [vmem:[%s4441_s1 + $0x10] sm:$0xff]  ;;  %v577_v40 = vld [vmem:[%s4442_s2 + $0x20] sm:$0xff]  ;;  %v453_v41 = vld [vmem:[%s4441_s1 + $0x88] sm:$0xff] }
  0x19   : > { %2602 = vmatpush3.msra.mxu0 %v445_v14  ;;  %637 = vmatpush1.msra.mxu1 %v581_v32  ;;  %v437_v42 = vld [vmem:[%s4441_s1 + $0x8] sm:$0xff]  ;;  %v452_v43 = vld [vmem:[%s4441_s1 + $0x80] sm:$0xff]  ;;  %v3320_v46 = vld [vmem:[%s3208_s13 + $0x18] sm:$0xff] }
  0x1a   : > { %2603 = vmatprep.subr.mxu0 %v460_v15  ;;  %638 = vmatprep.subr.mxu1 %v580_v34  ;;  %v436_v44 = vld [vmem:[%s4441_s1] sm:$0xff]  ;;  %v3325_v47 = vld [vmem:[%s3208_s13 + $0x10] sm:$0xff]  ;;  %v3328_v48 = vld [vmem:[%s3208_s13 + $0x28] sm:$0xff] }
  0x1b   : > { %2604 = vmatpush3.msra.mxu0 %v444_v16  ;;  %639 = vmatpush1.msra.mxu1 %v579_v36  ;;  %v3317_v45 = vld [vmem:[%s3208_s13] sm:$0xff]  ;;  %v3336_v50 = vld [vmem:[%s3208_s13 + $0x38] sm:$0xff]  ;;  %v3341_v51 = vld [vmem:[%s3208_s13 + $0x30] sm:$0xff] }
  0x1c   : > { %2605 = vmatprep.subr.mxu0 %v459_v17  ;;  %640 = vmatprep.subr.mxu1 %v578_v38  ;;  %v3333_v49 = vld [vmem:[%s3208_s13 + $0x20] sm:$0xff]  ;;  %v3344_v52 = vld [vmem:[%s3208_s13 + $0x48] sm:$0xff]  ;;  %v3352_v54 = vld [vmem:[%s3208_s13 + $0x58] sm:$0xff] }
  0x1d   : > { %2606 = vmatpush3.msra.mxu0 %v443_v18  ;;  %641 = vmatpush1.msra.mxu1 %v577_v40  ;;  %v3349_v53 = vld [vmem:[%s3208_s13 + $0x40] sm:$0xff]  ;;  %v3357_v55 = vld [vmem:[%s3208_s13 + $0x50] sm:$0xff]  ;;  %v3360_v56 = vld [vmem:[%s3208_s13 + $0x68] sm:$0xff] }
  0x1e   : > { %2607 = vmatprep.subr.mxu0 %v458_v19  ;;  %v3365_v57 = vld [vmem:[%s3208_s13 + $0x60] sm:$0xff]  ;;  %v3368_v58 = vld [vmem:[%s3208_s13 + $0x78] sm:$0xff]  ;;  %v3373_v59 = vld [vmem:[%s3208_s13 + $0x70] sm:$0xff] }
  0x1f   : > { %2608 = vmatpush3.msra.mxu0 %v442_v23  ;;  %v576_v60 = vld [vmem:[%s4442_s2 + $0x18] sm:$0xff]  ;;  %v575_v61 = vld [vmem:[%s4442_s2 + $0x10] sm:$0xff]  ;;  %v574_v62 = vld [vmem:[%s4442_s2 + $0x8] sm:$0xff] }
  0x20   : > { %2609 = vmatprep.subr.mxu0 %v457_v25  ;;  %642 = vmatprep.subr.mxu1 %v576_v60  ;;  %v573_v63 = vld [vmem:[%s4442_s2] sm:$0xff]  ;;  %v2420_v1 = vld [vmem:[%s4442_s2 + $0xf8] sm:$0xff]  ;;  %v2419_v5 = vld [vmem:[%s4442_s2 + $0xf0] sm:$0xff] }
  0x21   : > { %2610 = vmatpush3.msra.mxu0 %v441_v27  ;;  %643 = vmatpush1.msra.mxu1 %v575_v61  ;;  %v2418_v7 = vld [vmem:[%s4442_s2 + $0xe8] sm:$0xff]  ;;  %v2417_v8 = vld [vmem:[%s4442_s2 + $0xe0] sm:$0xff]  ;;  %v2416_v10 = vld [vmem:[%s4442_s2 + $0xd8] sm:$0xff] }
  0x22   : > { %2611 = vmatprep.subr.mxu0 %v456_v29  ;;  %644 = vmatprep.subr.mxu1 %v574_v62  ;;  %v2415_v12 = vld [vmem:[%s4442_s2 + $0xd0] sm:$0xff]  ;;  %v2414_v15 = vld [vmem:[%s4442_s2 + $0xc8] sm:$0xff]  ;;  %v2413_v16 = vld [vmem:[%s4442_s2 + $0xc0] sm:$0xff] }
  0x23   : > { %2612 = vmatpush3.msra.mxu0 %v440_v31  ;;  %645 = vmatpush1.msra.mxu1 %v573_v63  ;;  %v2412_v18 = vld [vmem:[%s4442_s2 + $0xb8] sm:$0xff]  ;;  %v2411_v20 = vld [vmem:[%s4442_s2 + $0xb0] sm:$0xff]  ;;  %v2410_v22 = vld [vmem:[%s4442_s2 + $0xa8] sm:$0xff] }
  0x24   : > { %2613 = vmatprep.subr.mxu0 %v455_v33  ;;  %808 = vmatprep.subr.mxu1 %v2420_v1  ;;  %v2409_v23 = vld [vmem:[%s4442_s2 + $0xa0] sm:$0xff]  ;;  %v2408_v25 = vld [vmem:[%s4442_s2 + $0x98] sm:$0xff]  ;;  %v2407_v27 = vld [vmem:[%s4442_s2 + $0x90] sm:$0xff] }
  0x25   : > { %2614 = vmatpush3.msra.mxu0 %v439_v35  ;;  %v2406_v29 = vld [vmem:[%s4442_s2 + $0x88] sm:$0xff]  ;;  %v2405_v30 = vld [vmem:[%s4442_s2 + $0x80] sm:$0xff]  ;;  %v774_v32 = vld [vmem:[%s4443_s3 + $0xf8] sm:$0xff] }
  0x26   : > { %2615 = vmatprep.subr.mxu0 %v454_v37  ;;  %v757_v60 = vld [vmem:[%s4443_s3 + $0x70] sm:$0xff]  ;;  %v772_v61 = vld [vmem:[%s4443_s3 + $0xe8] sm:$0xff]  ;;  %v771_v63 = vld [vmem:[%s4443_s3 + $0xe0] sm:$0xff] }
  0x27   : > { %2616 = vmatpush3.msra.mxu0 %v438_v39  ;;  %v756_v62 = vld [vmem:[%s4443_s3 + $0x68] sm:$0xff]  ;;  %v755_v1 = vld [vmem:[%s4443_s3 + $0x60] sm:$0xff] }
  0x28   : > { %2617 = vmatprep.subr.mxu0 %v453_v41 }
  0x29   : > { %2618 = vmatpush3.msra.mxu0 %v437_v42 }
  0x2a   : > { %2619 = vmatprep.subr.mxu0 %v452_v43  ;;  %v758_v43 = vld [vmem:[%s4443_s3 + $0x78] sm:$0xff] }
  0x2b   : > { %2620 = vmatpush3.msra.mxu0 %v436_v44  ;;  %v773_v44 = vld [vmem:[%s4443_s3 + $0xf0] sm:$0xff] }
  0x2c   : > { %533 = vmatmul.mubr.f32.vlgmr.msra.gmra.mxu0 %v3317_v45 }
  0x2d   : > { %537 = vmatprep.mubr.f32.mxu0 %v3320_v46 }
  0x30   : > { %538 = vmatmul.mubr.f32.gmra.mxu0 %v3325_v47 }
  0x31   : > { %542 = vmatprep.mubr.f32.mxu0 %v3328_v48 }
  0x34   : > { %543 = vmatmul.mubr.f32.gmra.mxu0 %v3333_v49 }
  0x35   : > { %547 = vmatprep.mubr.f32.mxu0 %v3336_v50 }
  0x38   : > { %548 = vmatmul.mubr.f32.gmra.mxu0 %v3341_v51 }
  0x39   : > { %552 = vmatprep.mubr.f32.mxu0 %v3344_v52 }
  0x3c   : > { %553 = vmatmul.mubr.f32.gmra.mxu0 %v3349_v53 }
  0x3d   : > { %557 = vmatprep.mubr.f32.mxu0 %v3352_v54 }
  0x40   : > { %558 = vmatmul.mubr.f32.gmra.mxu0 %v3357_v55 }
  0x41   : > { %562 = vmatprep.mubr.f32.mxu0 %v3360_v56 }
  0x44   : > { %563 = vmatmul.mubr.f32.gmra.mxu0 %v3365_v57 }
  0x45   : > { %567 = vmatprep.mubr.f32.mxu0 %v3368_v58 }
  0x48   : > { %568 = vmatmul.mubr.f32.gmra.mxu0 %v3373_v59 }
  0xec   : > { %v2621_v2 = vpop.f32.mrf.mxu0 }
  0xee   : > { %v2622_v3 = vpop.f32.mrf.mxu0 }
  0xef   : > { %v3392_v4 = vadd.f32 %v2622_v3, %v2621_v2  ;;  %v770_v2 = vld [vmem:[%s4443_s3 + $0xd8] sm:$0xff] }
  0xf0   : > { %v2624_v6 = vpop.f32.mrf.mxu0  ;;  %v754_v3 = vld [vmem:[%s4443_s3 + $0x58] sm:$0xff] }
  0xf1   : > { %2397 = vmatmul.mubr.msk.f32.vlgmr.msra.gmra.mxu1 %vm589_vm0, %v3392_v4 }
  0xf2   : > { %809 = vmatpush1.msra.mxu1 %v2419_v5  ;;  %v2625_v9 = vpop.f32.mrf.mxu0  ;;  %684 = vmatprep.mubr.f32.mxu1 %v3098_v0  ;;  %v769_v5 = vld [vmem:[%s4443_s3 + $0xd0] sm:$0xff] }
  0xf3   : > { %v3409_v11 = vadd.f32 %v2625_v9, %v2624_v6  ;;  %810 = vmatprep.subr.mxu1 %v2418_v7  ;;  %v753_v6 = vld [vmem:[%s4443_s3 + $0x50] sm:$0xff]  ;;  %v768_v7 = vld [vmem:[%s4443_s3 + $0xc8] sm:$0xff]  ;;  %v767_v9 = vld [vmem:[%s4443_s3 + $0xc0] sm:$0xff] }
  0xf4   : > { %v2627_v14 = vpop.f32.mrf.mxu0  ;;  %811 = vmatpush1.msra.mxu1 %v2417_v8  ;;  %v752_v8 = vld [vmem:[%s4443_s3 + $0x48] sm:$0xff] }
  0xf5   : > { %2398 = vmatmul.mubr.msk.f32.gmra.mxu1 %vm589_vm0, %v3409_v11  ;;  %812 = vmatprep.subr.mxu1 %v2416_v10  ;;  %v751_v10 = vld [vmem:[%s4443_s3 + $0x40] sm:$0xff] }
  0xf6   : > { %v2628_v17 = vpop.f32.mrf.mxu0  ;;  %690 = vmatprep.mubr.f32.mxu1 %v3098_v0  ;;  %813 = vmatpush1.msra.mxu1 %v2415_v12  ;;  %v766_v12 = vld [vmem:[%s4443_s3 + $0xb8] sm:$0xff] }
  0xf7   : > { %v3426_v19 = vadd.f32 %v2628_v17, %v2627_v14  ;;  %814 = vmatprep.subr.mxu1 %v2414_v15  ;;  %v750_v14 = vld [vmem:[%s4443_s3 + $0x38] sm:$0xff]  ;;  %v765_v15 = vld [vmem:[%s4443_s3 + $0xb0] sm:$0xff]  ;;  %v764_v17 = vld [vmem:[%s4443_s3 + $0xa8] sm:$0xff] }
  0xf8   : > { %v2630_v21 = vpop.f32.mrf.mxu0  ;;  %815 = vmatpush1.msra.mxu1 %v2413_v16  ;;  %v749_v16 = vld [vmem:[%s4443_s3 + $0x30] sm:$0xff] }
  0xf9   : > { %2399 = vmatmul.mubr.msk.f32.gmra.mxu1 %vm589_vm0, %v3426_v19  ;;  %816 = vmatprep.subr.mxu1 %v2412_v18  ;;  %v748_v18 = vld [vmem:[%s4443_s3 + $0x28] sm:$0xff] }
  0xfa   : > { %v2631_v24 = vpop.f32.mrf.mxu0  ;;  %696 = vmatprep.mubr.f32.mxu1 %v3098_v0  ;;  %817 = vmatpush1.msra.mxu1 %v2411_v20  ;;  %v763_v20 = vld [vmem:[%s4443_s3 + $0xa0] sm:$0xff] }
  0xfb   : > { %v3443_v26 = vadd.f32 %v2631_v24, %v2630_v21  ;;  %818 = vmatprep.subr.mxu1 %v2410_v22  ;;  %v747_v21 = vld [vmem:[%s4443_s3 + $0x20] sm:$0xff]  ;;  %v762_v22 = vld [vmem:[%s4443_s3 + $0x98] sm:$0xff]  ;;  %v761_v24 = vld [vmem:[%s4443_s3 + $0x90] sm:$0xff] }
  0xfc   : > { %v2633_v28 = vpop.f32.mrf.mxu0  ;;  %819 = vmatpush1.msra.mxu1 %v2409_v23  ;;  %v746_v23 = vld [vmem:[%s4443_s3 + $0x18] sm:$0xff] }
  0xfd   : > { %2400 = vmatmul.mubr.msk.f32.gmra.mxu1 %vm589_vm0, %v3443_v26  ;;  %820 = vmatprep.subr.mxu1 %v2408_v25  ;;  %v745_v25 = vld [vmem:[%s4443_s3 + $0x10] sm:$0xff] }
  0xfe   : > { %v2634_v31 = vpop.f32.mrf.mxu0  ;;  %702 = vmatprep.mubr.f32.mxu1 %v3098_v0  ;;  %821 = vmatpush1.msra.mxu1 %v2407_v27  ;;  %v760_v27 = vld [vmem:[%s4443_s3 + $0x88] sm:$0xff] }
  0xff   : > { %v3460_v33 = vadd.f32 %v2634_v31, %v2633_v28  ;;  %822 = vmatprep.subr.mxu1 %v2406_v29  ;;  %v744_v28 = vld [vmem:[%s4443_s3 + $0x8] sm:$0xff]  ;;  %v759_v29 = vld [vmem:[%s4443_s3 + $0x80] sm:$0xff]  ;;  %v2460_v31 = vld [vmem:[%s4443_s3 + $0x1f8] sm:$0xff] }
 0x100   : > { %v2636_v34 = vpop.f32.mrf.mxu0  ;;  %823 = vmatpush1.msra.mxu1 %v2405_v30  ;;  %v743_v30 = vld [vmem:[%s4443_s3] sm:$0xff]  ;;  %2645 = vmatprep.subr.mxu0 %v2460_v31 }
 0x101   : > { %2401 = vmatmul.mubr.msk.f32.gmra.mxu1 %vm589_vm0, %v3460_v33  ;;  %2701 = vmatprep.subr.mxu1 %v774_v32  ;;  %v2444_v32 = vld [vmem:[%s4443_s3 + $0x178] sm:$0xff] }
 0x102   : > { %v2637_v35 = vpop.f32.mrf.mxu0  ;;  %708 = vmatprep.mubr.f32.mxu1 %v3098_v0  ;;  %2646 = vmatpush3.msra.mxu0 %v2444_v32 }
 0x103   : > { %v3465_v36 = vadd.f32 %v2637_v35, %v2636_v34  ;;  %v2459_v34 = vld [vmem:[%s4443_s3 + $0x1f0] sm:$0xff] }
 0x104   : > { %v2639_v37 = vpop.f32.mrf.mxu0  ;;  %2647 = vmatprep.subr.mxu0 %v2459_v34  ;;  %v2443_v35 = vld [vmem:[%s4443_s3 + $0x170] sm:$0xff] }
 0x105   : > { %2402 = vmatmul.mubr.msk.f32.gmra.mxu1 %vm589_vm0, %v3465_v36  ;;  %2648 = vmatpush3.msra.mxu0 %v2443_v35 }
 0x106   : > { %v2640_v38 = vpop.f32.mrf.mxu0  ;;  %714 = vmatprep.mubr.f32.mxu1 %v3098_v0 }
 0x107   : > { %v3470_v39 = vadd.f32 %v2640_v38, %v2639_v37  ;;  %v2458_v37 = vld [vmem:[%s4443_s3 + $0x1e8] sm:$0xff] }
 0x108   : > { %v2642_v40 = vpop.f32.mrf.mxu0  ;;  %2649 = vmatprep.subr.mxu0 %v2458_v37  ;;  %v2442_v38 = vld [vmem:[%s4443_s3 + $0x168] sm:$0xff] }
 0x109   : > { %2403 = vmatmul.mubr.msk.f32.gmra.mxu1 %vm589_vm0, %v3470_v39  ;;  %2650 = vmatpush3.msra.mxu0 %v2442_v38 }
 0x10a   : > { %v2643_v41 = vpop.f32.mrf.mxu0  ;;  %720 = vmatprep.mubr.f32.mxu1 %v3098_v0 }
 0x10b   : > { %v3475_v42 = vadd.f32 %v2643_v41, %v2642_v40  ;;  %v2457_v40 = vld [vmem:[%s4443_s3 + $0x1e0] sm:$0xff] }
 0x10c   : > { %2651 = vmatprep.subr.mxu0 %v2457_v40  ;;  %v2441_v41 = vld [vmem:[%s4443_s3 + $0x160] sm:$0xff] }
 0x10d   : > { %2404 = vmatmul.mubr.msk.f32.gmra.mxu1 %vm589_vm0, %v3475_v42  ;;  %2652 = vmatpush3.msra.mxu0 %v2441_v41 }
 0x10e   : > { %856 = vmatprep.mubr.f32.mxu1 %v3098_v0 }
 0x111   : > { %2421 = vmatmul.mubr.msk.f32.vlgmr.msra.gmra.mxu1 %vm589_vm0, %v3392_v4 }
 0x112   : > { %862 = vmatprep.mubr.f32.mxu1 %v3098_v0  ;;  %2702 = vmatpush3.msra.mxu1 %v758_v43  ;;  %v2456_v43 = vld [vmem:[%s4443_s3 + $0x1d8] sm:$0xff] }
 0x113   : > { %2703 = vmatprep.subr.mxu1 %v773_v44  ;;  %2653 = vmatprep.subr.mxu0 %v2456_v43  ;;  %v2440_v44 = vld [vmem:[%s4443_s3 + $0x158] sm:$0xff] }
 0x114   : > { %2704 = vmatpush3.msra.mxu1 %v757_v60  ;;  %2654 = vmatpush3.msra.mxu0 %v2440_v44  ;;  %v2455_v60 = vld [vmem:[%s4443_s3 + $0x1d0] sm:$0xff] }
 0x115   : > { %2422 = vmatmul.mubr.msk.f32.gmra.mxu1 %vm589_vm0, %v3409_v11  ;;  %2705 = vmatprep.subr.mxu1 %v772_v61  ;;  %v2439_v61 = vld [vmem:[%s4443_s3 + $0x150] sm:$0xff] }
 0x116   : > { %868 = vmatprep.mubr.f32.mxu1 %v3098_v0  ;;  %2706 = vmatpush3.msra.mxu1 %v756_v62  ;;  %v2454_v62 = vld [vmem:[%s4443_s3 + $0x1c8] sm:$0xff] }
 0x117   : > { %2707 = vmatprep.subr.mxu1 %v771_v63  ;;  %2655 = vmatprep.subr.mxu0 %v2455_v60  ;;  %v2438_v63 = vld [vmem:[%s4443_s3 + $0x148] sm:$0xff] }
 0x118   : > { %2708 = vmatpush3.msra.mxu1 %v755_v1  ;;  %2656 = vmatpush3.msra.mxu0 %v2439_v61  ;;  %v2453_v1 = vld [vmem:[%s4443_s3 + $0x1c0] sm:$0xff] }
 0x119   : > { %2423 = vmatmul.mubr.msk.f32.gmra.mxu1 %vm589_vm0, %v3426_v19  ;;  %2709 = vmatprep.subr.mxu1 %v770_v2  ;;  %v2437_v2 = vld [vmem:[%s4443_s3 + $0x140] sm:$0xff] }
 0x11a   : > { %874 = vmatprep.mubr.f32.mxu1 %v3098_v0  ;;  %2710 = vmatpush3.msra.mxu1 %v754_v3  ;;  %v2452_v3 = vld [vmem:[%s4443_s3 + $0x1b8] sm:$0xff] }
 0x11b   : > { %2711 = vmatprep.subr.mxu1 %v769_v5  ;;  %2657 = vmatprep.subr.mxu0 %v2454_v62  ;;  %v2436_v5 = vld [vmem:[%s4443_s3 + $0x138] sm:$0xff] }
 0x11c   : > { %2712 = vmatpush3.msra.mxu1 %v753_v6  ;;  %2658 = vmatpush3.msra.mxu0 %v2438_v63  ;;  %v2451_v6 = vld [vmem:[%s4443_s3 + $0x1b0] sm:$0xff] }
 0x11d   : > { %2424 = vmatmul.mubr.msk.f32.gmra.mxu1 %vm589_vm0, %v3443_v26  ;;  %2713 = vmatprep.subr.mxu1 %v768_v7  ;;  %v2435_v7 = vld [vmem:[%s4443_s3 + $0x130] sm:$0xff] }
 0x11e   : > { %880 = vmatprep.mubr.f32.mxu1 %v3098_v0  ;;  %2714 = vmatpush3.msra.mxu1 %v752_v8  ;;  %v2450_v8 = vld [vmem:[%s4443_s3 + $0x1a8] sm:$0xff] }
 0x11f   : > { %2715 = vmatprep.subr.mxu1 %v767_v9  ;;  %2659 = vmatprep.subr.mxu0 %v2453_v1  ;;  %v2434_v9 = vld [vmem:[%s4443_s3 + $0x128] sm:$0xff] }
 0x120   : > { %2716 = vmatpush3.msra.mxu1 %v751_v10  ;;  %2660 = vmatpush3.msra.mxu0 %v2437_v2  ;;  %v2449_v10 = vld [vmem:[%s4443_s3 + $0x1a0] sm:$0xff] }
 0x121   : > { %2425 = vmatmul.mubr.msk.f32.gmra.mxu1 %vm589_vm0, %v3460_v33  ;;  %2717 = vmatprep.subr.mxu1 %v766_v12  ;;  %v2433_v12 = vld [vmem:[%s4443_s3 + $0x120] sm:$0xff] }
 0x122   : > { %886 = vmatprep.mubr.f32.mxu1 %v3098_v0  ;;  %2718 = vmatpush3.msra.mxu1 %v750_v14  ;;  %v2448_v14 = vld [vmem:[%s4443_s3 + $0x198] sm:$0xff] }
 0x123   : > { %2719 = vmatprep.subr.mxu1 %v765_v15  ;;  %2661 = vmatprep.subr.mxu0 %v2452_v3  ;;  %v2432_v15 = vld [vmem:[%s4443_s3 + $0x118] sm:$0xff] }
 0x124   : > { %2720 = vmatpush3.msra.mxu1 %v749_v16  ;;  %2662 = vmatpush3.msra.mxu0 %v2436_v5  ;;  %v2447_v16 = vld [vmem:[%s4443_s3 + $0x190] sm:$0xff] }
 0x125   : > { %2426 = vmatmul.mubr.msk.f32.gmra.mxu1 %vm589_vm0, %v3465_v36  ;;  %2721 = vmatprep.subr.mxu1 %v764_v17  ;;  %v2431_v17 = vld [vmem:[%s4443_s3 + $0x110] sm:$0xff] }
 0x126   : > { %892 = vmatprep.mubr.f32.mxu1 %v3098_v0  ;;  %2722 = vmatpush3.msra.mxu1 %v748_v18  ;;  %v2446_v18 = vld [vmem:[%s4443_s3 + $0x188] sm:$0xff] }
 0x127   : > { %2723 = vmatprep.subr.mxu1 %v763_v20  ;;  %2663 = vmatprep.subr.mxu0 %v2451_v6  ;;  %v2430_v20 = vld [vmem:[%s4443_s3 + $0x108] sm:$0xff] }
 0x128   : > { %2724 = vmatpush3.msra.mxu1 %v747_v21  ;;  %2664 = vmatpush3.msra.mxu0 %v2435_v7  ;;  %v2445_v21 = vld [vmem:[%s4443_s3 + $0x180] sm:$0xff] }
 0x129   : > { %2427 = vmatmul.mubr.msk.f32.gmra.mxu1 %vm589_vm0, %v3470_v39  ;;  %2725 = vmatprep.subr.mxu1 %v762_v22  ;;  %v2429_v22 = vld [vmem:[%s4443_s3 + $0x100] sm:$0xff] }
 0x12a   : > { %898 = vmatprep.mubr.f32.mxu1 %v3098_v0  ;;  %2726 = vmatpush3.msra.mxu1 %v746_v23  ;;  %v2476_v23 = vld [vmem:[%s4442_s2 + $0x178] sm:$0xff] }
 0x12b   : > { %2727 = vmatprep.subr.mxu1 %v761_v24  ;;  %2665 = vmatprep.subr.mxu0 %v2450_v8 }
 0x12c   : > { %2728 = vmatpush3.msra.mxu1 %v745_v25  ;;  %2666 = vmatpush3.msra.mxu0 %v2434_v9 }
 0x12d   : > { %2428 = vmatmul.mubr.msk.f32.gmra.mxu1 %vm589_vm0, %v3475_v42  ;;  %2729 = vmatprep.subr.mxu1 %v760_v27 }
 0x12e   : > { %2730 = vmatpush3.msra.mxu1 %v744_v28  ;;  %2667 = vmatprep.subr.mxu0 %v2449_v10 }
 0x12f   : > { %2731 = vmatprep.subr.mxu1 %v759_v29  ;;  %2668 = vmatpush3.msra.mxu0 %v2433_v12 }
 0x130   : > { %2732 = vmatpush3.msra.mxu1 %v743_v30  ;;  %2669 = vmatprep.subr.mxu0 %v2448_v14 }
 0x131   : > { %2670 = vmatpush3.msra.mxu0 %v2432_v15 }
 0x132   : > { %2671 = vmatprep.subr.mxu0 %v2447_v16 }
 0x133   : > { %2672 = vmatpush3.msra.mxu0 %v2431_v17 }
 0x134   : > { %2673 = vmatprep.subr.mxu0 %v2446_v18 }
 0x135   : > { %2674 = vmatpush3.msra.mxu0 %v2430_v20 }
 0x136   : > { %2675 = vmatprep.subr.mxu0 %v2445_v21 }
 0x137   : > { %2676 = vmatpush3.msra.mxu0 %v2429_v22  ;;  %v2475_v22 = vld [vmem:[%s4442_s2 + $0x170] sm:$0xff] }
 0x138   : > { %1197 = vmatprep.subr.mxu0 %v2476_v23  ;;  %v2474_v23 = vld [vmem:[%s4442_s2 + $0x168] sm:$0xff] }
 0x1b1   : > { %v680_v24 = vpop.f32.mrf.mxu1 }
 0x1b2   : > { %v727_v28 = vmul.f32 %v680_v24, %v3317_v45 }
 0x1b3   : > { %v682_v25 = vpop.f32.mrf.mxu1 }
 0x1b4   : > { %v728_v27 = vmul.f32 %v682_v25, %v3220_v13  ;;  %v2473_v25 = vld [vmem:[%s4442_s2 + $0x160] sm:$0xff] }
 0x1b5   : > { %v686_v29 = vpop.f32.mrf.mxu1 }
 0x1b6   : > { %1123 = vmatprep.mubr.f32.mxu1 %v728_v27  ;;  %v729_v32 = vmul.f32 %v686_v29, %v3325_v47  ;;  %v2471_v29 = vld [vmem:[%s4442_s2 + $0x150] sm:$0xff] }
 0x1b7   : > { %v688_v30 = vpop.f32.mrf.mxu1  ;;  %1124 = vmatmul.mubr.f32.vlgmr.msra.gmra.mxu1 %v727_v28 }
 0x1b8   : > { %v730_v31 = vmul.f32 %v688_v30, %v3320_v46  ;;  %v2470_v30 = vld [vmem:[%s4442_s2 + $0x148] sm:$0xff] }
 0x1b9   : > { %v692_v34 = vpop.f32.mrf.mxu1 }
 0x1ba   : > { %1128 = vmatprep.mubr.f32.mxu1 %v730_v31  ;;  %v731_v38 = vmul.f32 %v692_v34, %v3333_v49  ;;  %v2469_v31 = vld [vmem:[%s4442_s2 + $0x140] sm:$0xff] }
 0x1bb   : > { %v694_v35 = vpop.f32.mrf.mxu1  ;;  %1129 = vmatmul.mubr.f32.gmra.mxu1 %v729_v32  ;;  %v2468_v32 = vld [vmem:[%s4442_s2 + $0x138] sm:$0xff] }
 0x1bc   : > { %v732_v37 = vmul.f32 %v694_v35, %v3328_v48 }
 0x1bd   : > { %v698_v40 = vpop.f32.mrf.mxu1 }
 0x1be   : > { %1133 = vmatprep.mubr.f32.mxu1 %v732_v37  ;;  %v733_v44 = vmul.f32 %v698_v40, %v3341_v51  ;;  %v2467_v37 = vld [vmem:[%s4442_s2 + $0x130] sm:$0xff]  ;;  %v2465_v40 = vld [vmem:[%s4442_s2 + $0x120] sm:$0xff] }
 0x1bf   : > { %v700_v41 = vpop.f32.mrf.mxu1  ;;  %1134 = vmatmul.mubr.f32.gmra.mxu1 %v731_v38  ;;  %v2466_v38 = vld [vmem:[%s4442_s2 + $0x128] sm:$0xff] }
 0x1c0   : > { %v734_v43 = vmul.f32 %v700_v41, %v3336_v50  ;;  %v2464_v41 = vld [vmem:[%s4442_s2 + $0x118] sm:$0xff] }
 0x1c1   : > { %v704_v60 = vpop.f32.mrf.mxu1 }
 0x1c2   : > { %1138 = vmatprep.mubr.f32.mxu1 %v734_v43  ;;  %v735_v63 = vmul.f32 %v704_v60, %v3349_v53  ;;  %v2463_v60 = vld [vmem:[%s4442_s2 + $0x110] sm:$0xff] }
 0x1c3   : > { %v706_v61 = vpop.f32.mrf.mxu1  ;;  %1139 = vmatmul.mubr.f32.gmra.mxu1 %v733_v44 }
 0x1c4   : > { %v736_v62 = vmul.f32 %v706_v61, %v3344_v52  ;;  %v2462_v61 = vld [vmem:[%s4442_s2 + $0x108] sm:$0xff] }
 0x1c5   : > { %v710_v1 = vpop.f32.mrf.mxu1 }
 0x1c6   : > { %1143 = vmatprep.mubr.f32.mxu1 %v736_v62  ;;  %v737_v5 = vmul.f32 %v710_v1, %v3357_v55  ;;  %v2461_v62 = vld [vmem:[%s4442_s2 + $0x100] sm:$0xff] }
 0x1c7   : > { %v712_v2 = vpop.f32.mrf.mxu1  ;;  %1144 = vmatmul.mubr.f32.gmra.mxu1 %v735_v63  ;;  %v2532_v63 = vld [vmem:[%s4442_s2 + $0x1f8] sm:$0xff] }
 0x1c8   : > { %v738_v3 = vmul.f32 %v712_v2, %v3352_v54 }
 0x1c9   : > { %v716_v6 = vpop.f32.mrf.mxu1 }
 0x1ca   : > { %1148 = vmatprep.mubr.f32.mxu1 %v738_v3  ;;  %v739_v9 = vmul.f32 %v716_v6, %v3365_v57 }
 0x1cb   : > { %v718_v7 = vpop.f32.mrf.mxu1  ;;  %1149 = vmatmul.mubr.f32.gmra.mxu1 %v737_v5 }
 0x1cc   : > { %v740_v8 = vmul.f32 %v718_v7, %v3360_v56 }
 0x1cd   : > { %v722_v10 = vpop.f32.mrf.mxu1 }
 0x1ce   : > { %1153 = vmatprep.mubr.f32.mxu1 %v740_v8  ;;  %v741_v15 = vmul.f32 %v722_v10, %v3373_v59 }
 0x1cf   : > { %v724_v12 = vpop.f32.mrf.mxu1  ;;  %1154 = vmatmul.mubr.f32.gmra.mxu1 %v739_v9 }
 0x1d0   : > { %v742_v14 = vmul.f32 %v724_v12, %v3368_v58 }
 0x1d1   : > { %v858_v16 = vpop.f32.mrf.mxu1 }
 0x1d2   : > { %1158 = vmatprep.mubr.f32.mxu1 %v742_v14  ;;  %v905_v20 = vmul.f32 %v858_v16, %v3317_v45  ;;  %v2472_v45 = vld [vmem:[%s4442_s2 + $0x158] sm:$0xff] }
 0x1d3   : > { %v860_v17 = vpop.f32.mrf.mxu1  ;;  %1159 = vmatmul.mubr.f32.gmra.mxu1 %v741_v15  ;;  %v2525_v15 = vld [vmem:[%s4442_s2 + $0x1c0] sm:$0xff]  ;;  %v2524_v16 = vld [vmem:[%s4442_s2 + $0x1b8] sm:$0xff] }
 0x1d4   : > { %v906_v18 = vmul.f32 %v860_v17, %v3220_v13  ;;  %v2523_v17 = vld [vmem:[%s4442_s2 + $0x1b0] sm:$0xff] }
 0x1d5   : > { %v864_v21 = vpop.f32.mrf.mxu1 }
 0x1d6   : > { %1018 = vmatprep.mubr.f32.mxu0 %v906_v18  ;;  %v907_v27 = vmul.f32 %v864_v21, %v3325_v47  ;;  %v2522_v18 = vld [vmem:[%s4442_s2 + $0x1a8] sm:$0xff]  ;;  %v2520_v21 = vld [vmem:[%s4442_s2 + $0x198] sm:$0xff] }
 0x1d7   : > { %v866_v24 = vpop.f32.mrf.mxu1  ;;  %1019 = vmatmul.mubr.f32.vlgmr.msra.gmra.mxu0 %v905_v20  ;;  %v2521_v20 = vld [vmem:[%s4442_s2 + $0x1a0] sm:$0xff] }
 0x1d8   : > { %v908_v13 = vmul.f32 %v866_v24, %v3320_v46  ;;  %1198 = vmatpush1.msra.mxu0 %v2475_v22  ;;  %v2519_v22 = vld [vmem:[%s4442_s2 + $0x190] sm:$0xff]  ;;  %v2517_v24 = vld [vmem:[%s4442_s2 + $0x180] sm:$0xff] }
 0x1d9   : > { %v870_v28 = vpop.f32.mrf.mxu1  ;;  %1199 = vmatprep.subr.mxu0 %v2474_v23  ;;  %v2518_v23 = vld [vmem:[%s4442_s2 + $0x188] sm:$0xff] }
 0x1da   : > { %1023 = vmatprep.mubr.f32.mxu0 %v908_v13  ;;  %1200 = vmatpush1.msra.mxu0 %v2473_v25  ;;  %v909_v34 = vmul.f32 %v870_v28, %v3333_v49  ;;  %v2516_v25 = vld [vmem:[%s4443_s3 + $0x2f8] sm:$0xff]  ;;  %v2497_v28 = vld [vmem:[%s4443_s3 + $0x260] sm:$0xff] }
 0x1db   : > { %v872_v46 = vpop.f32.mrf.mxu1  ;;  %1024 = vmatmul.mubr.f32.gmra.mxu0 %v907_v27  ;;  %1201 = vmatprep.subr.mxu0 %v2472_v45  ;;  %v2500_v13 = vld [vmem:[%s4443_s3 + $0x278] sm:$0xff]  ;;  %v2514_v45 = vld [vmem:[%s4443_s3 + $0x2e8] sm:$0xff] }
 0x1dc   : > { %v910_v47 = vmul.f32 %v872_v46, %v3328_v48  ;;  %1202 = vmatpush1.msra.mxu0 %v2471_v29  ;;  %2757 = vmatprep.subr.mxu1 %v2516_v25  ;;  %v2498_v27 = vld [vmem:[%s4443_s3 + $0x268] sm:$0xff]  ;;  %v2512_v29 = vld [vmem:[%s4443_s3 + $0x2d8] sm:$0xff]  ;;  %v2495_v46 = vld [vmem:[%s4443_s3 + $0x250] sm:$0xff] }
 0x1dd   : > { %v876_v35 = vpop.f32.mrf.mxu1  ;;  %1203 = vmatprep.subr.mxu0 %v2470_v30  ;;  %2758 = vmatpush3.msra.mxu1 %v2500_v13  ;;  %v2496_v30 = vld [vmem:[%s4443_s3 + $0x258] sm:$0xff]  ;;  %v2571_v13 = vld [vmem:[%s4443_s3 + $0x3f0] sm:$0xff] }
 0x1de   : > { %1028 = vmatprep.mubr.f32.mxu0 %v910_v47  ;;  %1204 = vmatpush1.msra.mxu0 %v2469_v31  ;;  %v911_v43 = vmul.f32 %v876_v35, %v3341_v51  ;;  %v2510_v31 = vld [vmem:[%s4443_s3 + $0x2c8] sm:$0xff]  ;;  %v2492_v35 = vld [vmem:[%s4443_s3 + $0x238] sm:$0xff] }
 0x1df   : > { %v878_v48 = vpop.f32.mrf.mxu1  ;;  %1029 = vmatmul.mubr.f32.gmra.mxu0 %v909_v34  ;;  %1205 = vmatprep.subr.mxu0 %v2468_v32  ;;  %v2494_v47 = vld [vmem:[%s4443_s3 + $0x248] sm:$0xff]  ;;  %v2493_v32 = vld [vmem:[%s4443_s3 + $0x240] sm:$0xff]  ;;  %v2508_v34 = vld [vmem:[%s4443_s3 + $0x2b8] sm:$0xff] }
 0x1e0   : > { %v912_v49 = vmul.f32 %v878_v48, %v3336_v50  ;;  %1206 = vmatpush1.msra.mxu0 %v2467_v37  ;;  %v2491_v37 = vld [vmem:[%s4443_s3 + $0x230] sm:$0xff]  ;;  %v2490_v48 = vld [vmem:[%s4443_s3 + $0x228] sm:$0xff]  ;;  %v2556_v25 = vld [vmem:[%s4443_s3 + $0x378] sm:$0xff] }
 0x1e1   : > { %v882_v44 = vpop.f32.mrf.mxu1  ;;  %1207 = vmatprep.subr.mxu0 %v2466_v38  ;;  %v2506_v38 = vld [vmem:[%s4443_s3 + $0x2a8] sm:$0xff] }
 0x1e2   : > { %1033 = vmatprep.mubr.f32.mxu0 %v912_v49  ;;  %1208 = vmatpush1.msra.mxu0 %v2465_v40  ;;  %v913_v1 = vmul.f32 %v882_v44, %v3349_v53  ;;  %v2504_v40 = vld [vmem:[%s4443_s3 + $0x298] sm:$0xff]  ;;  %v2486_v44 = vld [vmem:[%s4443_s3 + $0x208] sm:$0xff] }
 0x1e3   : > { %v884_v50 = vpop.f32.mrf.mxu1  ;;  %1034 = vmatmul.mubr.f32.gmra.mxu0 %v911_v43  ;;  %1209 = vmatprep.subr.mxu0 %v2464_v41  ;;  %v2488_v49 = vld [vmem:[%s4443_s3 + $0x218] sm:$0xff]  ;;  %v2487_v41 = vld [vmem:[%s4443_s3 + $0x210] sm:$0xff]  ;;  %v2502_v43 = vld [vmem:[%s4443_s3 + $0x288] sm:$0xff] }
 0x1e4   : > { %v914_v51 = vmul.f32 %v884_v50, %v3344_v52  ;;  %1210 = vmatpush1.msra.mxu0 %v2463_v60  ;;  %v2501_v60 = vld [vmem:[%s4443_s3 + $0x280] sm:$0xff]  ;;  %v2572_v50 = vld [vmem:[%s4443_s3 + $0x3f8] sm:$0xff] }
 0x1e5   : > { %v888_v2 = vpop.f32.mrf.mxu1  ;;  %1211 = vmatprep.subr.mxu0 %v2462_v61  ;;  %v2485_v61 = vld [vmem:[%s4443_s3 + $0x200] sm:$0xff] }
 0x1e6   : > { %1038 = vmatprep.mubr.f32.mxu0 %v914_v51  ;;  %1212 = vmatpush1.msra.mxu0 %v2461_v62  ;;  %v915_v6 = vmul.f32 %v888_v2, %v3357_v55  ;;  %v2530_v55 = vld [vmem:[%s4442_s2 + $0x1e8] sm:$0xff] }
 0x1e7   : > { %v890_v3 = vpop.f32.mrf.mxu1  ;;  %1039 = vmatmul.mubr.f32.gmra.mxu0 %v913_v1  ;;  %1489 = vmatprep.subr.mxu0 %v2532_v63 }
 0x1e8   : > { %v916_v5 = vmul.f32 %v890_v3, %v3352_v54  ;;  %v2531_v54 = vld [vmem:[%s4442_s2 + $0x1f0] sm:$0xff] }
 0x1e9   : > { %v894_v7 = vpop.f32.mrf.mxu1 }
 0x1ea   : > { %1043 = vmatprep.mubr.f32.mxu0 %v916_v5  ;;  %v917_v9 = vmul.f32 %v894_v7, %v3365_v57  ;;  %v2528_v57 = vld [vmem:[%s4442_s2 + $0x1d8] sm:$0xff] }
 0x1eb   : > { %v896_v52 = vpop.f32.mrf.mxu1  ;;  %1044 = vmatmul.mubr.f32.gmra.mxu0 %v915_v6 }
 0x1ec   : > { %v918_v8 = vmul.f32 %v896_v52, %v3360_v56  ;;  %v2529_v56 = vld [vmem:[%s4442_s2 + $0x1e0] sm:$0xff] }
 0x1ed   : > { %v900_v53 = vpop.f32.mrf.mxu1 }
 0x1ee   : > { %1048 = vmatprep.mubr.f32.mxu0 %v918_v8  ;;  %v919_v14 = vmul.f32 %v900_v53, %v3373_v59  ;;  %v2526_v59 = vld [vmem:[%s4442_s2 + $0x1c8] sm:$0xff] }
 0x1ef   : > { %v902_v10 = vpop.f32.mrf.mxu1  ;;  %1049 = vmatmul.mubr.f32.gmra.mxu0 %v917_v9 }
 0x1f0   : > { %v920_v12 = vmul.f32 %v902_v10, %v3368_v58  ;;  %v2527_v58 = vld [vmem:[%s4442_s2 + $0x1d0] sm:$0xff] }
 0x1f2   : > { %1053 = vmatprep.mubr.f32.mxu0 %v920_v12 }
 0x1f3   : > { %1054 = vmatmul.mubr.f32.gmra.mxu0 %v919_v14 }
 0x1f4   : > { %1245 = vmatprep.mubr.f32.mxu0 %v3098_v0 }
 0x1f7   : > { %2477 = vmatmul.mubr.msk.f32.vlgmr.msra.gmra.mxu0 %vm589_vm0, %v3392_v4 }
 0x1f8   : > { %1490 = vmatpush1.msra.mxu0 %v2531_v54  ;;  %1251 = vmatprep.mubr.f32.mxu0 %v3098_v0 }
 0x1f9   : > { %1491 = vmatprep.subr.mxu0 %v2530_v55 }
 0x1fa   : > { %1492 = vmatpush1.msra.mxu0 %v2529_v56 }
 0x1fb   : > { %2478 = vmatmul.mubr.msk.f32.gmra.mxu0 %vm589_vm0, %v3409_v11  ;;  %1493 = vmatprep.subr.mxu0 %v2528_v57 }
 0x1fc   : > { %1257 = vmatprep.mubr.f32.mxu0 %v3098_v0  ;;  %1494 = vmatpush1.msra.mxu0 %v2527_v58 }
 0x1fd   : > { %1495 = vmatprep.subr.mxu0 %v2526_v59 }
 0x1fe   : > { %1496 = vmatpush1.msra.mxu0 %v2525_v15 }
 0x1ff   : > { %2479 = vmatmul.mubr.msk.f32.gmra.mxu0 %vm589_vm0, %v3426_v19  ;;  %1497 = vmatprep.subr.mxu0 %v2524_v16 }
 0x200   : > { %1263 = vmatprep.mubr.f32.mxu0 %v3098_v0  ;;  %1498 = vmatpush1.msra.mxu0 %v2523_v17 }
 0x201   : > { %1499 = vmatprep.subr.mxu0 %v2522_v18 }
 0x202   : > { %1500 = vmatpush1.msra.mxu0 %v2521_v20  ;;  %v3984_v20 = vld [vmem:[%s3208_s13 + $0x8] sm:$0xff] }
 0x203   : > { %2480 = vmatmul.mubr.msk.f32.gmra.mxu0 %vm589_vm0, %v3443_v26  ;;  %1501 = vmatprep.subr.mxu0 %v2520_v21 }
 0x204   : > { %1269 = vmatprep.mubr.f32.mxu0 %v3098_v0  ;;  %1502 = vmatpush1.msra.mxu0 %v2519_v22  ;;  %v3988_v22 = vld [vmem:[%s3208_s13] sm:$0xff] }
 0x205   : > { %1503 = vmatprep.subr.mxu0 %v2518_v23 }
 0x206   : > { %1504 = vmatpush1.msra.mxu0 %v2517_v24 }
 0x207   : > { %2481 = vmatmul.mubr.msk.f32.gmra.mxu0 %vm589_vm0, %v3460_v33 }
 0x208   : > { %1275 = vmatprep.mubr.f32.mxu0 %v3098_v0 }
 0x20b   : > { %2482 = vmatmul.mubr.msk.f32.gmra.mxu0 %vm589_vm0, %v3465_v36 }
 0x20c   : > { %1281 = vmatprep.mubr.f32.mxu0 %v3098_v0 }
 0x20f   : > { %2483 = vmatmul.mubr.msk.f32.gmra.mxu0 %vm589_vm0, %v3470_v39 }
 0x210   : > { %1287 = vmatprep.mubr.f32.mxu0 %v3098_v0 }
 0x213   : > { %2484 = vmatmul.mubr.msk.f32.gmra.mxu0 %vm589_vm0, %v3475_v42 }
 0x214   : > { %1537 = vmatprep.mubr.f32.mxu0 %v3098_v0 }
 0x217   : > { %2533 = vmatmul.mubr.msk.f32.vlgmr.msra.gmra.mxu0 %vm589_vm0, %v3392_v4  ;;  %v2515_v4 = vld [vmem:[%s4443_s3 + $0x2f0] sm:$0xff] }
 0x218   : > { %1543 = vmatprep.mubr.f32.mxu0 %v3098_v0  ;;  %2759 = vmatprep.subr.mxu1 %v2515_v4 }
 0x21b   : > { %2534 = vmatmul.mubr.msk.f32.gmra.mxu0 %vm589_vm0, %v3409_v11  ;;  %v2499_v11 = vld [vmem:[%s4443_s3 + $0x270] sm:$0xff] }
 0x21c   : > { %1549 = vmatprep.mubr.f32.mxu0 %v3098_v0  ;;  %2760 = vmatpush3.msra.mxu1 %v2499_v11  ;;  %v2555_v11 = vld [vmem:[%s4443_s3 + $0x370] sm:$0xff] }
 0x21d   : > { %2761 = vmatprep.subr.mxu1 %v2514_v45  ;;  %v4001_v45 = vld [vmem:[%s3208_s13 + $0x18] sm:$0xff] }
 0x21e   : > { %2762 = vmatpush3.msra.mxu1 %v2498_v27 }
 0x21f   : > { %2535 = vmatmul.mubr.msk.f32.gmra.mxu0 %vm589_vm0, %v3426_v19  ;;  %v2513_v19 = vld [vmem:[%s4443_s3 + $0x2e0] sm:$0xff] }
 0x220   : > { %1555 = vmatprep.mubr.f32.mxu0 %v3098_v0  ;;  %2763 = vmatprep.subr.mxu1 %v2513_v19  ;;  %v2570_v19 = vld [vmem:[%s4443_s3 + $0x3e8] sm:$0xff] }
 0x221   : > { %2764 = vmatpush3.msra.mxu1 %v2497_v28  ;;  %v4008_v28 = vld [vmem:[%s3208_s13 + $0x10] sm:$0xff] }
 0x222   : > { %2765 = vmatprep.subr.mxu1 %v2512_v29 }
 0x223   : > { %2536 = vmatmul.mubr.msk.f32.gmra.mxu0 %vm589_vm0, %v3443_v26  ;;  %2766 = vmatpush3.msra.mxu1 %v2496_v30  ;;  %v2511_v26 = vld [vmem:[%s4443_s3 + $0x2d0] sm:$0xff] }
 0x224   : > { %1561 = vmatprep.mubr.f32.mxu0 %v3098_v0  ;;  %2767 = vmatprep.subr.mxu1 %v2511_v26  ;;  %v2554_v26 = vld [vmem:[%s4443_s3 + $0x368] sm:$0xff] }
 0x225   : > { %2768 = vmatpush3.msra.mxu1 %v2495_v46  ;;  %v2569_v46 = vld [vmem:[%s4443_s3 + $0x3e0] sm:$0xff] }
 0x226   : > { %2769 = vmatprep.subr.mxu1 %v2510_v31 }
 0x227   : > { %2537 = vmatmul.mubr.msk.f32.gmra.mxu0 %vm589_vm0, %v3460_v33  ;;  %2770 = vmatpush3.msra.mxu1 %v2494_v47  ;;  %v2509_v33 = vld [vmem:[%s4443_s3 + $0x2c0] sm:$0xff] }
 0x228   : > { %1567 = vmatprep.mubr.f32.mxu0 %v3098_v0  ;;  %2771 = vmatprep.subr.mxu1 %v2509_v33  ;;  %v2553_v47 = vld [vmem:[%s4443_s3 + $0x360] sm:$0xff]  ;;  %v4021_v33 = vld [vmem:[%s3208_s13 + $0x28] sm:$0xff] }
 0x229   : > { %2772 = vmatpush3.msra.mxu1 %v2493_v32 }
 0x22a   : > { %2773 = vmatprep.subr.mxu1 %v2508_v34  ;;  %v2568_v34 = vld [vmem:[%s4443_s3 + $0x3d8] sm:$0xff] }
 0x22b   : > { %2538 = vmatmul.mubr.msk.f32.gmra.mxu0 %vm589_vm0, %v3465_v36  ;;  %2774 = vmatpush3.msra.mxu1 %v2492_v35  ;;  %v2507_v36 = vld [vmem:[%s4443_s3 + $0x2b0] sm:$0xff]  ;;  %v4028_v35 = vld [vmem:[%s3208_s13 + $0x20] sm:$0xff] }
 0x22c   : > { %1573 = vmatprep.mubr.f32.mxu0 %v3098_v0  ;;  %2775 = vmatprep.subr.mxu1 %v2507_v36 }
 0x22d   : > { %2776 = vmatpush3.msra.mxu1 %v2491_v37 }
 0x22e   : > { %2777 = vmatprep.subr.mxu1 %v2506_v38  ;;  %v2552_v38 = vld [vmem:[%s4443_s3 + $0x358] sm:$0xff] }
 0x22f   : > { %2539 = vmatmul.mubr.msk.f32.gmra.mxu0 %vm589_vm0, %v3470_v39  ;;  %2778 = vmatpush3.msra.mxu1 %v2490_v48  ;;  %v2505_v39 = vld [vmem:[%s4443_s3 + $0x2a0] sm:$0xff]  ;;  %v2567_v48 = vld [vmem:[%s4443_s3 + $0x3d0] sm:$0xff] }
 0x230   : > { %1579 = vmatprep.mubr.f32.mxu0 %v3098_v0  ;;  %2779 = vmatprep.subr.mxu1 %v2505_v39  ;;  %v2489_v0 = vld [vmem:[%s4443_s3 + $0x220] sm:$0xff] }
 0x231   : > { %2780 = vmatpush3.msra.mxu1 %v2489_v0  ;;  %v2551_v0 = vld [vmem:[%s4443_s3 + $0x350] sm:$0xff] }
 0x232   : > { %2781 = vmatprep.subr.mxu1 %v2504_v40  ;;  %v4041_v40 = vld [vmem:[%s3208_s13 + $0x38] sm:$0xff] }
 0x233   : > { %2540 = vmatmul.mubr.msk.f32.gmra.mxu0 %vm589_vm0, %v3475_v42  ;;  %2782 = vmatpush3.msra.mxu1 %v2488_v49  ;;  %v2503_v42 = vld [vmem:[%s4443_s3 + $0x290] sm:$0xff] }
 0x234   : > { %2783 = vmatprep.subr.mxu1 %v2503_v42  ;;  %v2566_v42 = vld [vmem:[%s4443_s3 + $0x3c8] sm:$0xff] }
 0x235   : > { %2784 = vmatpush3.msra.mxu1 %v2487_v41  ;;  %v4048_v41 = vld [vmem:[%s3208_s13 + $0x30] sm:$0xff] }
 0x236   : > { %2785 = vmatprep.subr.mxu1 %v2502_v43 }
 0x237   : > { %2786 = vmatpush3.msra.mxu1 %v2486_v44 }
 0x238   : > { %2787 = vmatprep.subr.mxu1 %v2501_v60  ;;  %v2550_v60 = vld [vmem:[%s4443_s3 + $0x348] sm:$0xff] }
 0x239   : > { %2788 = vmatpush3.msra.mxu1 %v2485_v61  ;;  %v2565_v61 = vld [vmem:[%s4443_s3 + $0x3c0] sm:$0xff] }
 0x23a   : > { %2813 = vmatprep.subr.mxu1 %v2572_v50 }
 0x297   : > { %v2677_v62 = vpop.f32.mrf.mxu0 }
 0x299   : > { %v2678_v51 = vpop.f32.mrf.mxu0 }
 0x29a   : > { %v3967_v63 = vadd.f32 %v2678_v51, %v2677_v62  ;;  %v2549_v62 = vld [vmem:[%s4443_s3 + $0x340] sm:$0xff]  ;;  %v4061_v51 = vld [vmem:[%s3208_s13 + $0x48] sm:$0xff] }
 0x29b   : > { %v2680_v1 = vpop.f32.mrf.mxu0 }
 0x29d   : > { %v2681_v2 = vpop.f32.mrf.mxu0 }
 0x29e   : > { %v3969_v3 = vadd.f32 %v2681_v2, %v2680_v1  ;;  %v2564_v2 = vld [vmem:[%s4443_s3 + $0x3b8] sm:$0xff] }
 0x29f   : > { %v2683_v5 = vpop.f32.mrf.mxu0 }
 0x2a1   : > { %v2684_v6 = vpop.f32.mrf.mxu0 }
 0x2a2   : > { %v3971_v7 = vadd.f32 %v2684_v6, %v2683_v5  ;;  %v4068_v5 = vld [vmem:[%s3208_s13 + $0x40] sm:$0xff] }
 0x2a3   : > { %v2686_v52 = vpop.f32.mrf.mxu0 }
 0x2a5   : > { %v2687_v8 = vpop.f32.mrf.mxu0 }
 0x2a6   : > { %v3973_v9 = vadd.f32 %v2687_v8, %v2686_v52  ;;  %v2548_v8 = vld [vmem:[%s4443_s3 + $0x338] sm:$0xff] }
 0x2a7   : > { %v2689_v53 = vpop.f32.mrf.mxu0 }
 0x2a9   : > { %v2690_v10 = vpop.f32.mrf.mxu0 }
 0x2aa   : > { %v3975_v12 = vadd.f32 %v2690_v10, %v2689_v53  ;;  %v2563_v53 = vld [vmem:[%s4443_s3 + $0x3b0] sm:$0xff] }
 0x2ab   : > { %v2692_v14 = vpop.f32.mrf.mxu0 }
 0x2ad   : > { %v2693_v54 = vpop.f32.mrf.mxu0 }
 0x2ae   : > { %v3977_v55 = vadd.f32 %v2693_v54, %v2692_v14  ;;  %v2547_v14 = vld [vmem:[%s4443_s3 + $0x330] sm:$0xff]  ;;  %v4081_v54 = vld [vmem:[%s3208_s13 + $0x58] sm:$0xff] }
 0x2af   : > { %v2695_v56 = vpop.f32.mrf.mxu0 }
 0x2b1   : > { %v2696_v57 = vpop.f32.mrf.mxu0 }
 0x2b2   : > { %v3979_v58 = vadd.f32 %v2696_v57, %v2695_v56  ;;  %v2562_v57 = vld [vmem:[%s4443_s3 + $0x3a8] sm:$0xff] }
 0x2b3   : > { %v2698_v59 = vpop.f32.mrf.mxu0 }
 0x2b5   : > { %v2699_v15 = vpop.f32.mrf.mxu0 }
 0x2b6   : > { %v3981_v16 = vadd.f32 %v2699_v15, %v2698_v59  ;;  %v4088_v59 = vld [vmem:[%s3208_s13 + $0x50] sm:$0xff] }
 0x2b7   : > { %v1247_v17 = vpop.f32.mrf.mxu0 }
 0x2b8   : > { %v1294_v23 = vmul.f32 %v3988_v22, %v1247_v17 }
 0x2b9   : > { %v1249_v18 = vpop.f32.mrf.mxu0 }
 0x2ba   : > { %v1295_v21 = vmul.f32 %v3984_v20, %v1249_v18  ;;  %v2546_v18 = vld [vmem:[%s4443_s3 + $0x328] sm:$0xff] }
 0x2bb   : > { %v1253_v24 = vpop.f32.mrf.mxu0 }
 0x2bc   : > { %1407 = vmatprep.mubr.f32.mxu1 %v1295_v21  ;;  %v1296_v29 = vmul.f32 %v4008_v28, %v1253_v24  ;;  %v2561_v21 = vld [vmem:[%s4443_s3 + $0x3a0] sm:$0xff] }
 0x2bd   : > { %v1255_v4 = vpop.f32.mrf.mxu0  ;;  %1408 = vmatmul.mubr.f32.vlgmr.msra.gmra.mxu1 %v1294_v23  ;;  %v2545_v24 = vld [vmem:[%s4443_s3 + $0x320] sm:$0xff] }
 0x2be   : > { %v1297_v27 = vmul.f32 %v4001_v45, %v1255_v4  ;;  %2814 = vmatpush3.msra.mxu1 %v2556_v25  ;;  %v4101_v25 = vld [vmem:[%s3208_s13 + $0x68] sm:$0xff]  ;;  %v2560_v4 = vld [vmem:[%s4443_s3 + $0x398] sm:$0xff] }
 0x2bf   : > { %2815 = vmatprep.subr.mxu1 %v2571_v13  ;;  %v1259_v30 = vpop.f32.mrf.mxu0 }
 0x2c0   : > { %2816 = vmatpush3.msra.mxu1 %v2555_v11  ;;  %1412 = vmatprep.mubr.f32.mxu1 %v1297_v27  ;;  %v1298_v36 = vmul.f32 %v4028_v35, %v1259_v30  ;;  %v4108_v11 = vld [vmem:[%s3208_s13 + $0x60] sm:$0xff]  ;;  %v2559_v30 = vld [vmem:[%s4443_s3 + $0x390] sm:$0xff] }
 0x2c1   : > { %2817 = vmatprep.subr.mxu1 %v2570_v19  ;;  %v1261_v31 = vpop.f32.mrf.mxu0  ;;  %1413 = vmatmul.mubr.f32.gmra.mxu1 %v1296_v29  ;;  %v2544_v29 = vld [vmem:[%s4443_s3 + $0x318] sm:$0xff] }
 0x2c2   : > { %v1299_v32 = vmul.f32 %v4021_v33, %v1261_v31  ;;  %2818 = vmatpush3.msra.mxu1 %v2554_v26  ;;  %v3088_v31 = vld [vmem:[%s3208_s13 + $0x78] sm:$0xff] }
 0x2c3   : > { %2819 = vmatprep.subr.mxu1 %v2569_v46  ;;  %v1265_v37 = vpop.f32.mrf.mxu0  ;;  %v2543_v46 = vld [vmem:[%s4443_s3 + $0x310] sm:$0xff] }
 0x2c4   : > { %2820 = vmatpush3.msra.mxu1 %v2553_v47  ;;  %1417 = vmatprep.mubr.f32.mxu1 %v1299_v32  ;;  %v1300_v43 = vmul.f32 %v4048_v41, %v1265_v37  ;;  %v2558_v32 = vld [vmem:[%s4443_s3 + $0x388] sm:$0xff] }
 0x2c5   : > { %2821 = vmatprep.subr.mxu1 %v2568_v34  ;;  %v1267_v39 = vpop.f32.mrf.mxu0  ;;  %1418 = vmatmul.mubr.f32.gmra.mxu1 %v1298_v36  ;;  %v3089_v34 = vld [vmem:[%s3208_s13 + $0x70] sm:$0xff] }
 0x2c6   : > { %v1301_v49 = vmul.f32 %v4041_v40, %v1267_v39  ;;  %2822 = vmatpush3.msra.mxu1 %v2552_v38  ;;  %v2542_v38 = vld [vmem:[%s4443_s3 + $0x308] sm:$0xff] }
 0x2c7   : > { %2823 = vmatprep.subr.mxu1 %v2567_v48  ;;  %v1271_v44 = vpop.f32.mrf.mxu0  ;;  %v2557_v48 = vld [vmem:[%s4443_s3 + $0x380] sm:$0xff] }
 0x2c8   : > { %2824 = vmatpush3.msra.mxu1 %v2551_v0  ;;  %1422 = vmatprep.mubr.f32.mxu1 %v1301_v49  ;;  %v1302_v6 = vmul.f32 %v4068_v5, %v1271_v44  ;;  %v2541_v0 = vld [vmem:[%s4443_s3 + $0x300] sm:$0xff] }
 0x2c9   : > { %2825 = vmatprep.subr.mxu1 %v2566_v42  ;;  %v1273_v50 = vpop.f32.mrf.mxu0  ;;  %1423 = vmatmul.mubr.f32.gmra.mxu1 %v1300_v43 }
 0x2ca   : > { %v1303_v1 = vmul.f32 %v4061_v51, %v1273_v50  ;;  %2826 = vmatpush3.msra.mxu1 %v2550_v60 }
 0x2cb   : > { %2827 = vmatprep.subr.mxu1 %v2565_v61  ;;  %v1277_v52 = vpop.f32.mrf.mxu0 }
 0x2cc   : > { %2828 = vmatpush3.msra.mxu1 %v2549_v62  ;;  %1427 = vmatprep.mubr.f32.mxu1 %v1303_v1  ;;  %v1304_v15 = vmul.f32 %v4088_v59, %v1277_v52 }
 0x2cd   : > { %2829 = vmatprep.subr.mxu1 %v2564_v2  ;;  %v1279_v10 = vpop.f32.mrf.mxu0  ;;  %1428 = vmatmul.mubr.f32.gmra.mxu1 %v1302_v6 }
 0x2ce   : > { %v1305_v56 = vmul.f32 %v4081_v54, %v1279_v10  ;;  %2830 = vmatpush3.msra.mxu1 %v2548_v8 }
 0x2cf   : > { %2831 = vmatprep.subr.mxu1 %v2563_v53  ;;  %v1283_v17 = vpop.f32.mrf.mxu0 }
 0x2d0   : > { %2832 = vmatpush3.msra.mxu1 %v2547_v14  ;;  %1432 = vmatprep.mubr.f32.mxu1 %v1305_v56  ;;  %v1306_v27 = vmul.f32 %v4108_v11, %v1283_v17 }
 0x2d1   : > { %2833 = vmatprep.subr.mxu1 %v2562_v57  ;;  %v1285_v23 = vpop.f32.mrf.mxu0  ;;  %1433 = vmatmul.mubr.f32.gmra.mxu1 %v1304_v15 }
 0x2d2   : > { %v1307_v13 = vmul.f32 %v4101_v25, %v1285_v23  ;;  %2834 = vmatpush3.msra.mxu1 %v2546_v18  ;;  %v2733_v18 = vpop.f32.mrf.mxu1 }
 0x2d3   : > { %2835 = vmatprep.subr.mxu1 %v2561_v21  ;;  %v1289_v19 = vpop.f32.mrf.mxu0 }
 0x2d4   : > { %2836 = vmatpush3.msra.mxu1 %v2545_v24  ;;  %1437 = vmatprep.mubr.f32.mxu1 %v1307_v13  ;;  %v1308_v36 = vmul.f32 %v3089_v34, %v1289_v19 }
 0x2d5   : > { %2837 = vmatprep.subr.mxu1 %v2560_v4  ;;  %v1291_v26 = vpop.f32.mrf.mxu0  ;;  %1438 = vmatmul.mubr.f32.gmra.mxu1 %v1306_v27 }
 0x2d6   : > { %v1309_v47 = vmul.f32 %v3088_v31, %v1291_v26  ;;  %2838 = vmatpush3.msra.mxu1 %v2544_v29 }
 0x2d7   : > { %2839 = vmatprep.subr.mxu1 %v2559_v30  ;;  %v1539_v37 = vpop.f32.mrf.mxu0 }
 0x2d8   : > { %2840 = vmatpush3.msra.mxu1 %v2543_v46  ;;  %1442 = vmatprep.mubr.f32.mxu1 %v1309_v47  ;;  %v1586_v42 = vmul.f32 %v3988_v22, %v1539_v37 }
 0x2d9   : > { %2841 = vmatprep.subr.mxu1 %v2558_v32  ;;  %1443 = vmatmul.mubr.f32.gmra.mxu1 %v1308_v36  ;;  %v1541_v39 = vpop.f32.mrf.mxu0 }
 0x2da   : > { %v1587_v49 = vmul.f32 %v3984_v20, %v1541_v39  ;;  %2842 = vmatpush3.msra.mxu1 %v2542_v38 }
 0x2db   : > { %2843 = vmatprep.subr.mxu1 %v2557_v48  ;;  %v1545_v43 = vpop.f32.mrf.mxu0 }
 0x2dc   : > { %2844 = vmatpush3.msra.mxu1 %v2541_v0  ;;  %1699 = vmatprep.mubr.f32.mxu1 %v1587_v49  ;;  %v1588_v61 = vmul.f32 %v4008_v28, %v1545_v43 }
 0x2dd   : > { %v1547_v44 = vpop.f32.mrf.mxu0  ;;  %1700 = vmatmul.mubr.f32.vlgmr.msra.gmra.mxu1 %v1586_v42 }
 0x2de   : > { %v1589_v60 = vmul.f32 %v4001_v45, %v1547_v44 }
 0x2df   : > { %v1551_v50 = vpop.f32.mrf.mxu0 }
 0x2e0   : > { %1704 = vmatprep.mubr.f32.mxu1 %v1589_v60  ;;  %v1590_v20 = vmul.f32 %v4028_v35, %v1551_v50 }
 0x2e1   : > { %v1553_v62 = vpop.f32.mrf.mxu0  ;;  %1705 = vmatmul.mubr.f32.gmra.mxu1 %v1588_v61 }
 0x2e2   : > { %v1591_v1 = vmul.f32 %v4021_v33, %v1553_v62 }
 0x2e3   : > { %v1557_v2 = vpop.f32.mrf.mxu0 }
 0x2e4   : > { %1709 = vmatprep.mubr.f32.mxu1 %v1591_v1  ;;  %v1592_v52 = vmul.f32 %v4048_v41, %v1557_v2 }
 0x2e5   : > { %v1559_v22 = vpop.f32.mrf.mxu0  ;;  %1710 = vmatmul.mubr.f32.gmra.mxu1 %v1590_v20 }
 0x2e6   : > { %v1593_v6 = vmul.f32 %v4041_v40, %v1559_v22 }
 0x2e7   : > { %v1563_v8 = vpop.f32.mrf.mxu0 }
 0x2e8   : > { %1714 = vmatprep.mubr.f32.mxu1 %v1593_v6  ;;  %v1594_v53 = vmul.f32 %v4068_v5, %v1563_v8 }
 0x2e9   : > { %v1565_v45 = vpop.f32.mrf.mxu0  ;;  %1715 = vmatmul.mubr.f32.gmra.mxu1 %v1592_v52 }
 0x2ea   : > { %v1595_v28 = vmul.f32 %v4061_v51, %v1565_v45 }
 0x2eb   : > { %v1569_v10 = vpop.f32.mrf.mxu0 }
 0x2ec   : > { %1719 = vmatprep.mubr.f32.mxu1 %v1595_v28  ;;  %v1596_v14 = vmul.f32 %v4088_v59, %v1569_v10 }
 0x2ed   : > { %v1571_v33 = vpop.f32.mrf.mxu0  ;;  %1720 = vmatmul.mubr.f32.gmra.mxu1 %v1594_v53 }
 0x2ee   : > { %v1597_v35 = vmul.f32 %v4081_v54, %v1571_v33  ;;  %v2734_v54 = vpop.f32.mrf.mxu1 }
 0x2ef   : > { %v1575_v56 = vpop.f32.mrf.mxu0  ;;  %v2735_v50 = vadd.f32 %v2734_v54, %v2733_v18 }
 0x2f0   : > { %1724 = vmatprep.mubr.f32.mxu1 %v1597_v35  ;;  %v1598_v57 = vmul.f32 %v4108_v11, %v1575_v56  ;;  %v2736_v21 = vpop.f32.mrf.mxu1 }
 0x2f1   : > { %v1577_v40 = vpop.f32.mrf.mxu0  ;;  %1725 = vmatmul.mubr.f32.gmra.mxu1 %v1596_v14  ;;  %v1126_v20 = vadd.f32 %v2735_v50, %v3967_v63 }
 0x2f2   : > { %v1599_v41 = vmul.f32 %v4101_v25, %v1577_v40  ;;  %v2737_v59 = vpop.f32.mrf.mxu1 }
 0x2f3   : > { %v1581_v15 = vpop.f32.mrf.mxu0  ;;  %v2738_v22 = vadd.f32 %v2737_v59, %v2736_v21 }
 0x2f4   : > { %1729 = vmatprep.mubr.f32.mxu1 %v1599_v41  ;;  %v1600_v17 = vmul.f32 %v3089_v34, %v1581_v15  ;;  %v2739_v23 = vpop.f32.mrf.mxu1 }
 0x2f5   : > { %v1583_v51 = vpop.f32.mrf.mxu0  ;;  %1730 = vmatmul.mubr.f32.gmra.mxu1 %v1598_v57  ;;  %v1131_v28 = vadd.f32 %v2738_v22, %v3969_v3 }
 0x2f6   : > { %v1601_v5 = vmul.f32 %v3088_v31, %v1583_v51  ;;  %v2740_v24 = vpop.f32.mrf.mxu1 }
 0x2f7   : > { %v2741_v10 = vadd.f32 %v2740_v24, %v2739_v23 }
 0x2f8   : > { %1734 = vmatprep.mubr.f32.mxu1 %v1601_v5  ;;  %v2742_v13 = vpop.f32.mrf.mxu1 }
 0x2f9   : > { %1735 = vmatmul.mubr.f32.gmra.mxu1 %v1600_v17  ;;  %v1136_v41 = vadd.f32 %v2741_v10, %v3971_v7 }
 0x2fa   : > { %v2743_v4 = vpop.f32.mrf.mxu1 }
 0x2fb   : > { %v2744_v51 = vadd.f32 %v2743_v4, %v2742_v13 }
 0x2fc   : > { %v2745_v27 = vpop.f32.mrf.mxu1 }
 0x2fd   : > { %v1141_v7 = vadd.f32 %v2744_v51, %v3973_v9 }
 0x2fe   : > { %v2746_v25 = vpop.f32.mrf.mxu1 }
 0x2ff   : > { %v2747_v13 = vadd.f32 %v2746_v25, %v2745_v27 }
 0x300   : > { %v4148_v19 = vpop.f32.mrf.mxu1 }
 0x302   : > { %v4150_v11 = vpop.f32.mrf.mxu1 }
 0x303   : > { %v2750_v27 = vadd.f32 %v4150_v11, %v4148_v19 }
 0x304   : > { %v4152_v29 = vpop.f32.mrf.mxu1 }
 0x306   : > { %v4154_v30 = vpop.f32.mrf.mxu1 }
 0x307   : > { %v2753_v19 = vadd.f32 %v4154_v30, %v4152_v29 }
 0x308   : > { %v4156_v26 = vpop.f32.mrf.mxu1 }
 0x30a   : > { %v4158_v46 = vpop.f32.mrf.mxu1 }
 0x30b   : > { %v2756_v30 = vadd.f32 %v4158_v46, %v4156_v26 }
 0x37d   : > { %v2789_v31 = vpop.f32.mrf.mxu1 }
 0x37f   : > { %v2790_v47 = vpop.f32.mrf.mxu1 }
 0x380   : > { %v2791_v62 = vadd.f32 %v2790_v47, %v2789_v31 }
 0x381   : > { %v2792_v32 = vpop.f32.mrf.mxu1 }
 0x382   : > { %v1448_v6 = vadd.f32 %v2791_v62, %v1126_v20 }
 0x383   : > { %v2793_v34 = vpop.f32.mrf.mxu1 }
 0x384   : > { %v2794_v52 = vadd.f32 %v2793_v34, %v2792_v32 }
 0x385   : > { %v2795_v36 = vpop.f32.mrf.mxu1 }
 0x386   : > { %v1449_v14 = vadd.f32 %v2794_v52, %v1131_v28 }
 0x387   : > { %v2796_v37 = vpop.f32.mrf.mxu1 }
 0x388   : > { %v2797_v33 = vadd.f32 %v2796_v37, %v2795_v36 }
 0x389   : > { %v2798_v38 = vpop.f32.mrf.mxu1 }
 0x38a   : > { %v1450_v5 = vadd.f32 %v2797_v33, %v1136_v41 }
 0x38b   : > { %v2799_v48 = vpop.f32.mrf.mxu1 }
 0x38c   : > { %v2800_v18 = vadd.f32 %v2799_v48, %v2798_v38  ;;  %v1146_v38 = vadd.f32 %v2747_v13, %v3975_v12  ;;  %v1151_v12 = vadd.f32 %v2750_v27, %v3977_v55  ;;  %v1907_v13 = vld [vmem:[%s4446_s6] sm:$0xff]  ;;  %v2066_v27 = vld [vmem:[%s4448_s8 + $0x38] sm:$0xff] }
 0x38d   : > { %v2801_v39 = vpop.f32.mrf.mxu1 }
 0x38e   : > { %v1451_v32 = vadd.f32 %v2800_v18, %v1141_v7  ;;  %v1913_v18 = vld [vmem:[%s4446_s6 + $0x30] sm:$0xff] }
 0x38f   : > { %v2802_v0 = vpop.f32.mrf.mxu1  ;;  %v1909_v7 = vld [vmem:[%s4446_s6 + $0x10] sm:$0xff] }
 0x390   : > { %v2803_v4 = vadd.f32 %v2802_v0, %v2801_v39 }
 0x391   : > { %v2804_v49 = vpop.f32.mrf.mxu1 }
 0x392   : > { %v1452_v25 = vadd.f32 %v2803_v4, %v1146_v38  ;;  %v2074_v4 = vld [vmem:[%s4448_s8 + $0x78] sm:$0xff]  ;;  %v2068_v38 = vld [vmem:[%s4448_s8 + $0x48] sm:$0xff] }
 0x393   : > { %v2805_v42 = vpop.f32.mrf.mxu1  ;;  %2961 = vmatprep.subr.mxu1 %v2074_v4 }
 0x394   : > { %v2806_v39 = vadd.f32 %v2805_v42, %v2804_v49  ;;  %2962 = vmatpush3.msra.mxu1 %v2074_v4 }
 0x395   : > { %v4160_v43 = vpop.f32.mrf.mxu1 }
 0x396   : > { %v1453_v11 = vadd.f32 %v2806_v39, %v1151_v12  ;;  %v2064_v39 = vld [vmem:[%s4448_s8 + $0x28] sm:$0xff] }
 0x397   : > { %v4162_v44 = vpop.f32.mrf.mxu1 }
 0x398   : > { %v2809_v49 = vadd.f32 %v4162_v44, %v4160_v43 }
 0x399   : > { %v4164_v60 = vpop.f32.mrf.mxu1 }
 0x39b   : > { %v4166_v61 = vpop.f32.mrf.mxu1 }
 0x39c   : > { %v2812_v44 = vadd.f32 %v4166_v61, %v4164_v60 }
 0x39d   : > { %v2845_v1 = vpop.f32.mrf.mxu1 }
 0x39f   : > { %v2846_v2 = vpop.f32.mrf.mxu1 }
 0x3a0   : > { %v2847_v8 = vadd.f32 %v2846_v2, %v2845_v1 }
 0x3a1   : > { %v2848_v45 = vpop.f32.mrf.mxu1 }
 0x3a2   : > { %v4170_v53 = vadd.f32 %v2847_v8, %v1448_v6 }
 0x3a3   : > { %v2849_v35 = vpop.f32.mrf.mxu1 }
 0x3a4   : > { %v2850_v56 = vadd.f32 %v2849_v35, %v2848_v45  ;;  %v1748_v40 = vsel %vm589_vm0, %v4170_v53, 0.0  ;;  %v1781_v63 = vmul.f32 %v4170_v53, %v4170_v53  ;;  %v1156_v45 = vadd.f32 %v2753_v19, %v3979_v58 }
 0x3a5   : > { %v2851_v57 = vpop.f32.mrf.mxu1  ;;  %1749 = vadd.xlane.f32.xlu0 %v1748_v40 }
 0x3a6   : > { %v4177_v15 = vadd.f32 %v2850_v56, %v1449_v14  ;;  %v1789_v3 = vsel %vm589_vm0, %v1781_v63, 0.0  ;;  %v1454_v43 = vadd.f32 %v2809_v49, %v1156_v45  ;;  %v1161_v56 = vadd.f32 %v2756_v30, %v3981_v16 }
 0x3a7   : > { %v2852_v17 = vpop.f32.mrf.mxu1  ;;  %1790 = vadd.xlane.f32.xlu1 %v1789_v3 }
 0x3a8   : > { %v2853_v54 = vadd.f32 %v2852_v17, %v2851_v57  ;;  %v1751_v21 = vsel %vm589_vm0, %v4177_v15, 0.0  ;;  %v1782_v59 = vmul.f32 %v4177_v15, %v4177_v15  ;;  %v1455_v46 = vadd.f32 %v2812_v44, %v1161_v56  ;;  %v1914_v17 = vld [vmem:[%s4446_s6 + $0x38] sm:$0xff] }
 0x3a9   : > { %v2854_v23 = vpop.f32.mrf.mxu1  ;;  %1752 = vadd.xlane.f32.xlu0 %v1751_v21  ;;  %2933 = vmatprep.subr.mxu0 %v1914_v17  ;;  %v1912_v21 = vld [vmem:[%s4446_s6 + $0x28] sm:$0xff] }
 0x3aa   : > { %v4185_v24 = vadd.f32 %v2853_v54, %v1450_v5  ;;  %v1792_v31 = vsel %vm589_vm0, %v1782_v59, 0.0  ;;  %2934 = vmatpush3.msra.mxu0 %v1914_v17  ;;  %v1911_v59 = vld [vmem:[%s4446_s6 + $0x20] sm:$0xff] }
 0x3ab   : > { %v2855_v47 = vpop.f32.mrf.mxu1  ;;  %1793 = vadd.xlane.f32.xlu1 %v1792_v31  ;;  %2935 = vmatprep.subr.mxu0 %v1913_v18  ;;  %v1908_v31 = vld [vmem:[%s4446_s6 + $0x8] sm:$0xff] }
 0x3ac   : > { %v2856_v34 = vadd.f32 %v2855_v47, %v2854_v23  ;;  %v1754_v36 = vsel %vm589_vm0, %v4185_v24, 0.0  ;;  %v1783_v37 = vmul.f32 %v4185_v24, %v4185_v24  ;;  %2936 = vmatpush3.msra.mxu0 %v1913_v18  ;;  %v1910_v23 = vld [vmem:[%s4446_s6 + $0x18] sm:$0xff]  ;;  %v2073_v47 = vld [vmem:[%s4448_s8 + $0x70] sm:$0xff] }
 0x3ad   : > { %v2857_v48 = vpop.f32.mrf.mxu1  ;;  %1755 = vadd.xlane.f32.xlu0 %v1754_v36  ;;  %2937 = vmatprep.subr.mxu0 %v1912_v21  ;;  %v2070_v36 = vld [vmem:[%s4448_s8 + $0x58] sm:$0xff] }
 0x3ae   : > { %v4193_v9 = vadd.f32 %v2856_v34, %v1451_v32  ;;  %v1795_v1 = vsel %vm589_vm0, %v1783_v37, 0.0  ;;  %2938 = vmatpush3.msra.mxu0 %v1912_v21  ;;  %v2072_v32 = vld [vmem:[%s4448_s8 + $0x68] sm:$0xff]  ;;  %2963 = vmatprep.subr.mxu1 %v2073_v47  ;;  %v2071_v34 = vld [vmem:[%s4448_s8 + $0x60] sm:$0xff]  ;;  %v2069_v37 = vld [vmem:[%s4448_s8 + $0x50] sm:$0xff] }
 0x3af   : > { %v2858_v0 = vpop.f32.mrf.mxu1  ;;  %2939 = vmatprep.subr.mxu0 %v1911_v59  ;;  %2964 = vmatpush3.msra.mxu1 %v2073_v47 }
 0x3b0   : > { %v2859_v50 = vadd.f32 %v2858_v0, %v2857_v48  ;;  %v1757_v62 = vsel %vm589_vm0, %v4193_v9, 0.0  ;;  %v1784_v20 = vmul.f32 %v4193_v9, %v4193_v9  ;;  %2940 = vmatpush3.msra.mxu0 %v1911_v59  ;;  %2965 = vmatprep.subr.mxu1 %v2072_v32  ;;  %v2067_v48 = vld [vmem:[%s4448_s8 + $0x40] sm:$0xff] }
 0x3b1   : > { %v2860_v2 = vpop.f32.mrf.mxu1  ;;  %1758 = vadd.xlane.f32.xlu1 %v1757_v62  ;;  %1796 = vadd.xlane.f32.xlu0 %v1795_v1  ;;  %v2063_v0 = vld [vmem:[%s4448_s8 + $0x20] sm:$0xff] }
 0x3b2   : > { %v4203_v22 = vadd.f32 %v2859_v50, %v1452_v25  ;;  %v1798_v52 = vsel %vm589_vm0, %v1784_v20, 0.0  ;;  %2941 = vmatprep.subr.mxu0 %v1910_v23  ;;  %2966 = vmatpush3.msra.mxu1 %v2072_v32  ;;  %v2065_v25 = vld [vmem:[%s4448_s8 + $0x30] sm:$0xff] }
 0x3b3   : > { %v2861_v42 = vpop.f32.mrf.mxu1  ;;  %2942 = vmatpush3.msra.mxu0 %v1910_v23  ;;  %2967 = vmatprep.subr.mxu1 %v2071_v34 }
 0x3b4   : > { %v2862_v6 = vadd.f32 %v2861_v42, %v2860_v2  ;;  %v1760_v8 = vsel %vm589_vm0, %v4203_v22, 0.0  ;;  %v1785_v55 = vmul.f32 %v4203_v22, %v4203_v22  ;;  %2943 = vmatprep.subr.mxu0 %v1909_v7  ;;  %2968 = vmatpush3.msra.mxu1 %v2071_v34 }
 0x3b5   : > { %v2863_v28 = vpop.f32.mrf.mxu1  ;;  %1799 = vadd.xlane.f32.xlu1 %v1798_v52  ;;  %1761 = vadd.xlane.f32.xlu0 %v1760_v8 }
 0x3b6   : > { %v4215_v29 = vadd.f32 %v2862_v6, %v1453_v11  ;;  %v1801_v14 = vsel %vm589_vm0, %v1785_v55, 0.0  ;;  %2944 = vmatpush3.msra.mxu0 %v1909_v7  ;;  %2969 = vmatprep.subr.mxu1 %v2070_v36 }
 0x3b7   : > { %v2864_v10 = vpop.f32.mrf.mxu1  ;;  %2945 = vmatprep.subr.mxu0 %v1908_v31  ;;  %2970 = vmatpush3.msra.mxu1 %v2070_v36  ;;  %v4322_v36 = vld [vmem:[%s4444_s4] ss:$0 sm:$0xff] }
 0x3b8   : > { %v2865_v33 = vadd.f32 %v2864_v10, %v2863_v28  ;;  %v1763_v35 = vsel %vm589_vm0, %v4215_v29, 0.0  ;;  %v1786_v58 = vmul.f32 %v4215_v29, %v4215_v29  ;;  %2946 = vmatpush3.msra.mxu0 %v1908_v31  ;;  %2971 = vmatprep.subr.mxu1 %v2069_v37 }
 0x3b9   : > { %v2866_v40 = vpop.f32.mrf.mxu1  ;;  %1764 = vadd.xlane.f32.xlu1 %v1763_v35  ;;  %1802 = vadd.xlane.f32.xlu0 %v1801_v14 }
 0x3ba   : > { %v4227_v26 = vadd.f32 %v2865_v33, %v1454_v43  ;;  %v1804_v61 = vsel %vm589_vm0, %v1786_v58, 0.0  ;;  %2947 = vmatprep.subr.mxu0 %v1907_v13  ;;  %2972 = vmatpush3.msra.mxu1 %v2069_v37 }
 0x3bb   : > { %v2867_v63 = vpop.f32.mrf.mxu1  ;;  %2948 = vmatpush3.msra.mxu0 %v1907_v13  ;;  %2973 = vmatprep.subr.mxu1 %v2068_v38 }
 0x3bc   : > { %v2868_v60 = vadd.f32 %v2867_v63, %v2866_v40  ;;  %v1766_v41 = vsel %vm589_vm0, %v4227_v26, 0.0  ;;  %v1787_v57 = vmul.f32 %v4227_v26, %v4227_v26  ;;  %2974 = vmatpush3.msra.mxu1 %v2068_v38 }
 0x3bd   : > { %1805 = vadd.xlane.f32.xlu1 %v1804_v61  ;;  %1767 = vadd.xlane.f32.xlu0 %v1766_v41 }
 0x3be   : > { %v4234_v3 = vadd.f32 %v2868_v60, %v1455_v46  ;;  %v1807_v16 = vsel %vm589_vm0, %v1787_v57, 0.0  ;;  %2975 = vmatprep.subr.mxu1 %v2067_v48 }
 0x3bf   : > { %2976 = vmatpush3.msra.mxu1 %v2067_v48 }
 0x3c0   : > { %v1769_v51 = vsel %vm589_vm0, %v4234_v3, 0.0  ;;  %v1788_v5 = vmul.f32 %v4234_v3, %v4234_v3  ;;  %2977 = vmatprep.subr.mxu1 %v2066_v27 }
 0x3c1   : > { %1808 = vadd.xlane.f32.xlu0 %v1807_v16  ;;  %1770 = vadd.xlane.f32.xlu1 %v1769_v51 }
 0x3c2   : > { %v1810_v54 = vsel %vm589_vm0, %v1788_v5, 0.0  ;;  %2978 = vmatpush3.msra.mxu1 %v2066_v27 }
 0x3c3   : > { %2979 = vmatprep.subr.mxu1 %v2065_v25 }
 0x3c4   : > { %2980 = vmatpush3.msra.mxu1 %v2065_v25 }
 0x3c5   : > { %1811 = vadd.xlane.f32.xlu1 %v1810_v54  ;;  %2981 = vmatprep.subr.mxu1 %v2064_v39 }
 0x3c6   : > { %2982 = vmatpush3.msra.mxu1 %v2064_v39 }
 0x3c7   : > { %2983 = vmatprep.subr.mxu1 %v2063_v0 }
 0x3c8   : > { %2984 = vmatpush3.msra.mxu1 %v2063_v0 }
 0x42e   : > { %v1750_v50 = vpop.xlane.xlu0 %1749 }
 0x42f   : > { %v1773_v62 = vmul.f32 0.015625, %v1750_v50 }
 0x430   : > { %v1791_v1 = vpop.xlane.xlu1 %1790 }
 0x431   : > { %v1821_v20 = vmul.f32 %v1773_v62, %v1773_v62  ;;  %v1813_v12 = vmul.f32 0.015625, %v1791_v1  ;;  %v1845_v7 = vsub.f32 %v4170_v53, %v1773_v62  ;;  %v4328_v53 = vld [vmem:[%s4445_s5] ss:$0 sm:$0xff] }
 0x432   : > { %v1753_v2 = vpop.xlane.xlu0 %1752 }
 0x433   : > { %v1829_v19 = vsub.f32 %v1813_v12, %v1821_v20  ;;  %v1774_v11 = vmul.f32 0.015625, %v1753_v2 }
 0x434   : > { %v1794_v49 = vpop.xlane.xlu1 %1793 }
 0x435   : > { %v1837_v42 = vmax.f32 %v1829_v19, 0.0  ;;  %v1822_v6 = vmul.f32 %v1774_v11, %v1774_v11  ;;  %v1814_v52 = vmul.f32 0.015625, %v1794_v49  ;;  %v1846_v38 = vsub.f32 %v4177_v15, %v1774_v11 }
 0x436   : > { %v1756_v8 = vpop.xlane.xlu0 %1755 }
 0x437   : > { %v1853_v55 = vadd.f32 1e-05, %v1837_v42  ;;  %v1830_v45 = vsub.f32 %v1814_v52, %v1822_v6  ;;  %v4302_v28 = vmul.f32 0.015625, %v1756_v8 }
 0x439   : > { %3058 = vrsqrt.f32 %v1853_v55  ;;  %v1838_v30 = vmax.f32 %v1830_v45, 0.0  ;;  %v1823_v33 = vmul.f32 %v4302_v28, %v4302_v28  ;;  %v1847_v42 = vsub.f32 %v4185_v24, %v4302_v28 }
 0x43a   : > { %v1759_v43 = vpop.xlane.xlu1 %1758  ;;  %v1797_v44 = vpop.xlane.xlu0 %1796 }
 0x43b   : > { %v1854_v10 = vadd.f32 1e-05, %v1838_v30  ;;  %v4306_v35 = vmul.f32 0.015625, %v1759_v43  ;;  %v1815_v14 = vmul.f32 0.015625, %v1797_v44 }
 0x43d   : > { %3060 = vrsqrt.f32 %v1854_v10  ;;  %v1831_v58 = vsub.f32 %v1815_v14, %v1823_v33  ;;  %v1824_v46 = vmul.f32 %v4306_v35, %v4306_v35  ;;  %v1848_v33 = vsub.f32 %v4193_v9, %v4306_v35 }
 0x43e   : > { %v1800_v56 = vpop.xlane.xlu1 %1799  ;;  %v1762_v40 = vpop.xlane.xlu0 %1761 }
 0x43f   : > { %v1839_v63 = vmax.f32 %v1831_v58, 0.0  ;;  %v1816_v60 = vmul.f32 0.015625, %v1800_v56  ;;  %v4310_v61 = vmul.f32 0.015625, %v1762_v40 }
 0x441   : > { %v1855_v41 = vadd.f32 1e-05, %v1839_v63  ;;  %v1832_v57 = vsub.f32 %v1816_v60, %v1824_v46  ;;  %v1825_v16 = vmul.f32 %v4310_v61, %v4310_v61  ;;  %v1849_v46 = vsub.f32 %v4203_v22, %v4310_v61 }
 0x442   : > { %v1765_v51 = vpop.xlane.xlu1 %1764  ;;  %v1803_v5 = vpop.xlane.xlu0 %1802 }
 0x443   : > { %3062 = vrsqrt.f32 %v1855_v41  ;;  %v1840_v17 = vmax.f32 %v1832_v57, 0.0  ;;  %v4314_v18 = vmul.f32 0.015625, %v1765_v51  ;;  %v1817_v54 = vmul.f32 0.015625, %v1803_v5 }
 0x445   : > { %v1856_v21 = vadd.f32 1e-05, %v1840_v17  ;;  %v1833_v59 = vsub.f32 %v1817_v54, %v1825_v16  ;;  %v1826_v31 = vmul.f32 %v4314_v18, %v4314_v18  ;;  %v1850_v41 = vsub.f32 %v4215_v29, %v4314_v18 }
 0x446   : > { %v3059_v23 = vpop.eup %3058  ;;  %v1806_v13 = vpop.xlane.xlu1 %1805 }
 0x447   : > { %v1768_v4 = vpop.xlane.xlu0 %1767  ;;  %3064 = vrsqrt.f32 %v1856_v21  ;;  %v1841_v47 = vmax.f32 %v1833_v59, 0.0  ;;  %v1818_v32 = vmul.f32 0.015625, %v1806_v13  ;;  %v1869_v37 = vmul.f32 %v3059_v23, %v1845_v7  ;;  %v2061_v13 = vld [vmem:[%s4448_s8 + $0x10] sm:$0xff] }
 0x448   : > { %v1779_v34 = vmul.f32 0.015625, %v1768_v4  ;;  %v2060_v4 = vld [vmem:[%s4448_s8 + $0x8] sm:$0xff] }
 0x449   : > { %v1857_v48 = vadd.f32 1e-05, %v1841_v47  ;;  %v1834_v27 = vsub.f32 %v1818_v32, %v1826_v31  ;;  %v1884_v62 = vmul.f32 %v4322_v36, %v1869_v37  ;;  %v2059_v47 = vld [vmem:[%s4448_s8] sm:$0xff]  ;;  %v2210_v32 = vld [vmem:[%s4450_s10 + $0x78] sm:$0xff] }
 0x44a   : > { %v3061_v25 = vpop.eup %3060  ;;  %v1827_v39 = vmul.f32 %v1779_v34, %v1779_v34  ;;  %v1771_v50 = vpop.xlane.xlu1 %1770  ;;  %v1851_v61 = vsub.f32 %v4227_v26, %v1779_v34  ;;  %v2209_v34 = vld [vmem:[%s4450_s10 + $0x70] sm:$0xff]  ;;  %3005 = vmatprep.subr.mxu0 %v2210_v32  ;;  %v2207_v37 = vld [vmem:[%s4450_s10 + $0x60] sm:$0xff] }
 0x44b   : > { %v1809_v0 = vpop.xlane.xlu0 %1808  ;;  %v1870_v1 = vmul.f32 %v3061_v25, %v1846_v38  ;;  %3066 = vrsqrt.f32 %v1857_v48  ;;  %v1842_v20 = vmax.f32 %v1834_v27, 0.0  ;;  %v1780_v2 = vmul.f32 0.015625, %v1771_v50  ;;  %v2206_v38 = vld [vmem:[%s4450_s10 + $0x58] sm:$0xff]  ;;  %v2205_v48 = vld [vmem:[%s4450_s10 + $0x50] sm:$0xff]  ;;  %v2204_v27 = vld [vmem:[%s4450_s10 + $0x48] sm:$0xff] }
 0x44c   : > { %v1819_v12 = vmul.f32 0.015625, %v1809_v0  ;;  %v1899_v15 = vadd.f32 %v4328_v53, %v1884_v62  ;;  %v2202_v25 = vld [vmem:[%s4450_s10 + $0x38] sm:$0xff]  ;;  %v2200_v0 = vld [vmem:[%s4450_s10 + $0x28] sm:$0xff]  ;;  %v2199_v50 = vld [vmem:[%s4450_s10 + $0x20] sm:$0xff] }
 0x44d   : > { %v1858_v19 = vadd.f32 1e-05, %v1842_v20  ;;  %v1885_v49 = vmul.f32 %v4322_v36, %v1870_v1  ;;  %v1828_v6 = vmul.f32 %v1780_v2, %v1780_v2  ;;  %v1852_v29 = vsub.f32 %v4234_v3, %v1780_v2  ;;  %v2062_v3 = vld [vmem:[%s4448_s8 + $0x18] sm:$0xff]  ;;  %v2575_v62 = vld [vmem:[%s4447_s7] ss:$0 sm:$0xff] }
 0x44e   : > { %v1835_v11 = vsub.f32 %v1819_v12, %v1827_v39  ;;  %2949 = vmatprep.mubr.msk.f32.mxu0 %vm589_vm0, %v1899_v15  ;;  %v1812_v52 = vpop.xlane.xlu1 %1811  ;;  %2985 = vmatprep.subr.mxu1 %v2062_v3  ;;  %v2201_v39 = vld [vmem:[%s4450_s10 + $0x30] sm:$0xff] }
 0x44f   : > { %3068 = vrsqrt.f32 %v1858_v19  ;;  %v1820_v55 = vmul.f32 0.015625, %v1812_v52  ;;  %v1900_v45 = vadd.f32 %v4328_v53, %v1885_v49  ;;  %2986 = vmatpush3.msra.mxu1 %v2062_v3 }
 0x450   : > { %v1843_v8 = vmax.f32 %v1835_v11, 0.0  ;;  %v3063_v30 = vpop.eup %3062  ;;  %2987 = vmatprep.subr.mxu1 %v2061_v13 }
 0x451   : > { %v1836_v44 = vsub.f32 %v1820_v55, %v1828_v6  ;;  %2950 = vmatmul.mubr.msk.f32.vlgmr.msra.gmra.mxu0 %vm589_vm0, %v1900_v45  ;;  %v1871_v10 = vmul.f32 %v3063_v30, %v1847_v42  ;;  %2988 = vmatpush3.msra.mxu1 %v2061_v13 }
 0x452   : > { %v1859_v43 = vadd.f32 1e-05, %v1843_v8  ;;  %2989 = vmatprep.subr.mxu1 %v2060_v4  ;;  %3006 = vmatpush3.msra.mxu0 %v2210_v32 }
 0x453   : > { %v1844_v24 = vmax.f32 %v1836_v44, 0.0  ;;  %v1886_v28 = vmul.f32 %v4322_v36, %v1871_v10  ;;  %2990 = vmatpush3.msra.mxu1 %v2060_v4  ;;  %3007 = vmatprep.subr.mxu0 %v2209_v34 }
 0x454   : > { %3070 = vrsqrt.f32 %v1859_v43  ;;  %v3065_v14 = vpop.eup %3064  ;;  %2991 = vmatprep.subr.mxu1 %v2059_v47  ;;  %3008 = vmatpush3.msra.mxu0 %v2209_v34 }
 0x455   : > { %v1860_v58 = vadd.f32 1e-05, %v1844_v24  ;;  %v1901_v56 = vadd.f32 %v4328_v53, %v1886_v28  ;;  %v1872_v40 = vmul.f32 %v3065_v14, %v1848_v33  ;;  %2992 = vmatpush3.msra.mxu1 %v2059_v47 }
 0x457   : > { %3072 = vrsqrt.f32 %v1860_v58  ;;  %2952 = vmatprep.mubr.msk.f32.mxu0 %vm589_vm0, %v1901_v56  ;;  %v1887_v63 = vmul.f32 %v4322_v36, %v1872_v40  ;;  %v2198_v40 = vld [vmem:[%s4450_s10 + $0x18] sm:$0xff] }
 0x458   : > { %v3067_v60 = vpop.eup %3066 }
 0x459   : > { %v1902_v9 = vadd.f32 %v4328_v53, %v1887_v63  ;;  %v1873_v35 = vmul.f32 %v3067_v60, %v1849_v46  ;;  %v2197_v46 = vld [vmem:[%s4450_s10 + $0x10] sm:$0xff]  ;;  %v2196_v63 = vld [vmem:[%s4450_s10 + $0x8] sm:$0xff]  ;;  %v2195_v60 = vld [vmem:[%s4450_s10] sm:$0xff] }
 0x45b   : > { %2953 = vmatmul.mubr.msk.f32.gmra.mxu0 %vm589_vm0, %v1902_v9  ;;  %v1888_v57 = vmul.f32 %v4322_v36, %v1873_v35  ;;  %v2584_v9 = vld [vmem:[%s4449_s9] ss:$0 sm:$0xff] }
 0x45c   : > { %v3069_v16 = vpop.eup %3068 }
 0x45d   : > { %v1903_v51 = vadd.f32 %v4328_v53, %v1888_v57  ;;  %v1874_v22 = vmul.f32 %v3069_v16, %v1850_v41 }
 0x45f   : > { %2955 = vmatprep.mubr.msk.f32.mxu0 %vm589_vm0, %v1903_v51  ;;  %v1889_v5 = vmul.f32 %v4322_v36, %v1874_v22 }
 0x461   : > { %v3071_v17 = vpop.eup %3070  ;;  %v1904_v54 = vadd.f32 %v4328_v53, %v1889_v5 }
 0x462   : > { %v1875_v21 = vmul.f32 %v3071_v17, %v1851_v61 }
 0x463   : > { %2956 = vmatmul.mubr.msk.f32.gmra.mxu0 %vm589_vm0, %v1904_v54 }
 0x464   : > { %v1890_v18 = vmul.f32 %v4322_v36, %v1875_v21  ;;  %v3073_v59 = vpop.eup %3072 }
 0x465   : > { %v1876_v7 = vmul.f32 %v3073_v59, %v1852_v29 }
 0x466   : > { %v1905_v23 = vadd.f32 %v4328_v53, %v1890_v18 }
 0x467   : > { %v1891_v26 = vmul.f32 %v4322_v36, %v1876_v7  ;;  %v2208_v36 = vld [vmem:[%s4450_s10 + $0x68] sm:$0xff] }
 0x468   : > { %2958 = vmatprep.mubr.msk.f32.mxu0 %vm589_vm0, %v1905_v23  ;;  %3009 = vmatprep.subr.mxu0 %v2208_v36 }
 0x469   : > { %v1906_v31 = vadd.f32 %v4328_v53, %v1891_v26  ;;  %3010 = vmatpush3.msra.mxu0 %v2208_v36  ;;  %v2203_v53 = vld [vmem:[%s4450_s10 + $0x40] sm:$0xff] }
 0x46a   : > { %3011 = vmatprep.subr.mxu0 %v2207_v37  ;;  %v2585_v36 = vld [vmem:[%s4451_s11] ss:$0 sm:$0xff] }
 0x46b   : > { %2959 = vmatmul.mubr.msk.f32.gmra.mxu0 %vm589_vm0, %v1906_v31 }
 0x46c   : > { %3012 = vmatpush3.msra.mxu0 %v2207_v37 }
 0x46d   : > { %3013 = vmatprep.subr.mxu0 %v2206_v38 }
 0x46e   : > { %3014 = vmatpush3.msra.mxu0 %v2206_v38 }
 0x46f   : > { %3015 = vmatprep.subr.mxu0 %v2205_v48 }
 0x470   : > { %3016 = vmatpush3.msra.mxu0 %v2205_v48 }
 0x471   : > { %3017 = vmatprep.subr.mxu0 %v2204_v27 }
 0x472   : > { %3018 = vmatpush3.msra.mxu0 %v2204_v27 }
 0x473   : > { %3019 = vmatprep.subr.mxu0 %v2203_v53 }
 0x474   : > { %3020 = vmatpush3.msra.mxu0 %v2203_v53 }
 0x475   : > { %3021 = vmatprep.subr.mxu0 %v2202_v25 }
 0x476   : > { %3022 = vmatpush3.msra.mxu0 %v2202_v25 }
 0x477   : > { %3023 = vmatprep.subr.mxu0 %v2201_v39 }
 0x478   : > { %3024 = vmatpush3.msra.mxu0 %v2201_v39 }
 0x479   : > { %3025 = vmatprep.subr.mxu0 %v2200_v0 }
 0x47a   : > { %3026 = vmatpush3.msra.mxu0 %v2200_v0 }
 0x47b   : > { %3027 = vmatprep.subr.mxu0 %v2199_v50 }
 0x47c   : > { %3028 = vmatpush3.msra.mxu0 %v2199_v50 }
 0x47d   : > { %3029 = vmatprep.subr.mxu0 %v2198_v40 }
 0x47e   : > { %3030 = vmatpush3.msra.mxu0 %v2198_v40 }
 0x47f   : > { %3031 = vmatprep.subr.mxu0 %v2197_v46 }
 0x480   : > { %3032 = vmatpush3.msra.mxu0 %v2197_v46 }
 0x481   : > { %3033 = vmatprep.subr.mxu0 %v2196_v63 }
 0x482   : > { %3034 = vmatpush3.msra.mxu0 %v2196_v63 }
 0x483   : > { %3035 = vmatprep.subr.mxu0 %v2195_v60 }
 0x484   : > { %3036 = vmatpush3.msra.mxu0 %v2195_v60 }
 0x511   : > { %v2951_v1 = vpop.f32.mrf.mxu0 }
 0x512   : > { %v2018_v20 = vadd.f32 %v2951_v1, %v2575_v62 }
 0x513   : > { %v2012_v12 = vpop.f32.mrf.mxu0 }
 0x514   : > { %v2013_v2 = vadd.f32 %v2575_v62, %v2012_v12  ;;  %v2052_v19 = vmax.f32 %v2018_v20, 0.0 }
 0x516   : > { %v2051_v15 = vmax.f32 %v2013_v2, 0.0 }
 0x518   : > { %2993 = vmatprep.mubr.f32.mxu1 %v2051_v15 }
 0x519   : > { %2994 = vmatmul.mubr.f32.vlgmr.msra.gmra.mxu1 %v2052_v19 }
 0x51b   : > { %v2954_v11 = vpop.f32.mrf.mxu0 }
 0x51c   : > { %v2028_v49 = vadd.f32 %v2954_v11, %v2575_v62 }
 0x51d   : > { %v2022_v42 = vpop.f32.mrf.mxu0 }
 0x51e   : > { %v2023_v6 = vadd.f32 %v2575_v62, %v2022_v42  ;;  %v2054_v8 = vmax.f32 %v2028_v49, 0.0 }
 0x520   : > { %v2053_v52 = vmax.f32 %v2023_v6, 0.0 }
 0x522   : > { %2996 = vmatprep.mubr.f32.mxu1 %v2053_v52 }
 0x523   : > { %v2957_v55 = vpop.f32.mrf.mxu0  ;;  %2997 = vmatmul.mubr.f32.gmra.mxu1 %v2054_v8 }
 0x524   : > { %v2038_v45 = vadd.f32 %v2957_v55, %v2575_v62 }
 0x525   : > { %v2032_v30 = vpop.f32.mrf.mxu0 }
 0x526   : > { %v2033_v43 = vadd.f32 %v2575_v62, %v2032_v30  ;;  %v2056_v10 = vmax.f32 %v2038_v45, 0.0 }
 0x528   : > { %v2055_v44 = vmax.f32 %v2033_v43, 0.0 }
 0x52a   : > { %2999 = vmatprep.mubr.f32.mxu1 %v2055_v44 }
 0x52b   : > { %v2960_v33 = vpop.f32.mrf.mxu0  ;;  %3000 = vmatmul.mubr.f32.gmra.mxu1 %v2056_v10 }
 0x52c   : > { %v2048_v24 = vadd.f32 %v2960_v33, %v2575_v62 }
 0x52d   : > { %v2042_v28 = vpop.f32.mrf.mxu0 }
 0x52e   : > { %v2043_v14 = vadd.f32 %v2575_v62, %v2042_v28  ;;  %v2058_v56 = vmax.f32 %v2048_v24, 0.0 }
 0x530   : > { %v2057_v58 = vmax.f32 %v2043_v14, 0.0 }
 0x532   : > { %3002 = vmatprep.mubr.f32.mxu1 %v2057_v58 }
 0x533   : > { %3003 = vmatmul.mubr.f32.gmra.mxu1 %v2058_v56 }
 0x5d9   : > { %v2995_v35 = vpop.f32.mrf.mxu1 }
 0x5da   : > { %v2154_v41 = vadd.f32 %v2995_v35, %v2584_v9 }
 0x5db   : > { %v2148_v57 = vpop.f32.mrf.mxu1 }
 0x5dc   : > { %v2149_v16 = vadd.f32 %v2584_v9, %v2148_v57  ;;  %v2188_v22 = vmax.f32 %v2154_v41, 0.0 }
 0x5de   : > { %v2187_v51 = vmax.f32 %v2149_v16, 0.0 }
 0x5e0   : > { %3037 = vmatprep.mubr.f32.mxu0 %v2187_v51 }
 0x5e1   : > { %3038 = vmatmul.mubr.f32.vlgmr.msra.gmra.mxu0 %v2188_v22 }
 0x5e3   : > { %v2998_v61 = vpop.f32.mrf.mxu1 }
 0x5e4   : > { %v2164_v5 = vadd.f32 %v2998_v61, %v2584_v9 }
 0x5e5   : > { %v2158_v17 = vpop.f32.mrf.mxu1 }
 0x5e6   : > { %v2159_v54 = vadd.f32 %v2584_v9, %v2158_v17  ;;  %v2190_v29 = vmax.f32 %v2164_v5, 0.0 }
 0x5e8   : > { %v2189_v21 = vmax.f32 %v2159_v54, 0.0 }
 0x5ea   : > { %3040 = vmatprep.mubr.f32.mxu0 %v2189_v21 }
 0x5eb   : > { %v3001_v18 = vpop.f32.mrf.mxu1  ;;  %3041 = vmatmul.mubr.f32.gmra.mxu0 %v2190_v29 }
 0x5ec   : > { %v2174_v59 = vadd.f32 %v3001_v18, %v2584_v9 }
 0x5ed   : > { %v2168_v23 = vpop.f32.mrf.mxu1 }
 0x5ee   : > { %v2169_v7 = vadd.f32 %v2584_v9, %v2168_v23  ;;  %v2192_v31 = vmax.f32 %v2174_v59, 0.0 }
 0x5f0   : > { %v2191_v26 = vmax.f32 %v2169_v7, 0.0 }
 0x5f2   : > { %3043 = vmatprep.mubr.f32.mxu0 %v2191_v26 }
 0x5f3   : > { %v3004_v3 = vpop.f32.mrf.mxu1  ;;  %3044 = vmatmul.mubr.f32.gmra.mxu0 %v2192_v31 }
 0x5f4   : > { %v2184_v13 = vadd.f32 %v3004_v3, %v2584_v9 }
 0x5f5   : > { %v2178_v4 = vpop.f32.mrf.mxu1 }
 0x5f6   : > { %v2179_v47 = vadd.f32 %v2584_v9, %v2178_v4  ;;  %v2194_v34 = vmax.f32 %v2184_v13, 0.0 }
 0x5f8   : > { %v2193_v32 = vmax.f32 %v2179_v47, 0.0 }
 0x5fa   : > { %3046 = vmatprep.mubr.f32.mxu0 %v2193_v32 }
 0x5fb   : > { %3047 = vmatmul.mubr.f32.gmra.mxu0 %v2194_v34 }
 0x6a1   : > { %v3039_v37 = vpop.f32.mrf.mxu0 }
 0x6a2   : > { %v2290_v38 = vadd.f32 %v3039_v37, %v2585_v36 }
 0x6a3   : > { %v2284_v48 = vpop.f32.mrf.mxu0 }
 0x6a4   : > { %2324 = vst [vmem:[%s418_s19 + $0x8] sm:$0xff] %v2290_v38  ;;  %v2285_v27 = vadd.f32 %v2585_v36, %v2284_v48 }
 0x6a6   : > { %2323 = vst [vmem:[%s418_s19] sm:$0xff] %v2285_v27 }
 0x6ab   : > { %v3042_v53 = vpop.f32.mrf.mxu0 }
 0x6ac   : > { %v2300_v25 = vadd.f32 %v3042_v53, %v2585_v36 }
 0x6ad   : > { %v2294_v39 = vpop.f32.mrf.mxu0 }
 0x6ae   : > { %2326 = vst [vmem:[%s418_s19 + $0x18] sm:$0xff] %v2300_v25  ;;  %v2295_v0 = vadd.f32 %v2585_v36, %v2294_v39 }
 0x6b0   : > { %2325 = vst [vmem:[%s418_s19 + $0x10] sm:$0xff] %v2295_v0 }
 0x6b3   : > { %v3045_v50 = vpop.f32.mrf.mxu0 }
 0x6b4   : > { %v2310_v62 = vadd.f32 %v3045_v50, %v2585_v36 }
 0x6b5   : > { %v2304_v1 = vpop.f32.mrf.mxu0 }
 0x6b6   : > { %2328 = vst [vmem:[%s418_s19 + $0x28] sm:$0xff] %v2310_v62  ;;  %v2305_v20 = vadd.f32 %v2585_v36, %v2304_v1 }
 0x6b8   : > { %2327 = vst [vmem:[%s418_s19 + $0x20] sm:$0xff] %v2305_v20 }
 0x6bb   : > { %v3048_v12 = vpop.f32.mrf.mxu0 }
 0x6bc   : > { %v2320_v2 = vadd.f32 %v3048_v12, %v2585_v36 }
 0x6bd   : > { %v2314_v15 = vpop.f32.mrf.mxu0 }
 0x6be   : > { %2330 = vst [vmem:[%s418_s19 + $0x38] sm:$0xff] %v2320_v2  ;;  %v2315_v19 = vadd.f32 %v2585_v36, %v2314_v15 }
 0x6c0   : > { %2329 = vst [vmem:[%s418_s19 + $0x30] sm:$0xff] %v2315_v19 }
 0x6c1 PF: > { %s22_s21 = sadd.s32 1, %s3096_s21  }
 0x6c2   : > { %p19_p4 = scmp.ge.s32.totalorder %s22_s21, 4  }
 0x6c4   :  { %21 = sbr.rel (!%p19_p4) target bundleno = 1 (0x1), region = 104 }

</bundles_post_ra>
